<compile_context>
chip_gen: v6e
topology: v6e:2x2x1
jax: 0.10.0
libtpu: 0.0.40
codegen_flags: <defaults>
</compile_context>

<pallas_src>
import functools
import math

import jax
import jax.numpy as jnp
from jax import lax
from jax.experimental import pallas as pl
from jax.experimental.pallas import tpu as pltpu


# Order in which fused parameters are passed to the kernel.
_PARAM_ORDER = (
    "wqkv_s", "bqkv_s", "wo_s", "bo_s",          # self-attention
    "wq_c", "bq_c", "wkv_c", "bkv_c", "wo_c", "bo_c",   # cross-attention
    "w1", "b1", "w2", "b2",                      # feed-forward
    "g1", "be1", "g2", "be2", "g3", "be3",       # layer norms
)


# -----------------------------------------------------------------------------
# Fused decoder-layer kernel (one grid step per batch element)
# -----------------------------------------------------------------------------
def _decoder_layer_kernel(*refs, n_heads, eps, has_tgt_mask, has_src_mask):
    refs = list(refs)
    idx = 0
    x_ref = refs[idx]; idx += 1
    enc_ref = refs[idx]; idx += 1
    tgt_mask_ref = None
    src_mask_ref = None
    if has_tgt_mask:
        tgt_mask_ref = refs[idx]; idx += 1
    if has_src_mask:
        src_mask_ref = refs[idx]; idx += 1
    (wqkv_s_ref, bqkv_s_ref, wo_s_ref, bo_s_ref,
     wq_c_ref, bq_c_ref, wkv_c_ref, bkv_c_ref, wo_c_ref, bo_c_ref,
     w1_ref, b1_ref, w2_ref, b2_ref,
     g1_ref, be1_ref, g2_ref, be2_ref, g3_ref, be3_ref) = refs[idx:idx + 20]
    o_ref = refs[idx + 20]

    d = x_ref.shape[-1]
    dk = d // n_heads
    mxu_dtype = wqkv_s_ref.dtype          # f32 or bf16; accumulation stays f32

    def mm(a, w_ref):
        return jnp.dot(a.astype(mxu_dtype), w_ref[...],
                       preferred_element_type=jnp.float32)

    def layer_norm(h, g_ref, b_ref):
        mu = jnp.mean(h, axis=-1, keepdims=True)
        c = h - mu
        var = jnp.mean(c * c, axis=-1, keepdims=True)
        return c * lax.rsqrt(var + eps) * g_ref[...] + b_ref[...]

    def mha(q, k, v, wo_ref, bo_ref, mask_ref):
        # q already carries the 1/sqrt(d_k) scale (folded into Wq at init).
        sq = q.shape[0]
        wo = wo_ref[...]
        mask = None if mask_ref is None else mask_ref[0]        # (Sq, Sk) int32
        out = jnp.zeros((sq, d), jnp.float32)
        for h in range(n_heads):                 # static unroll, n_heads small
            sl = slice(h * dk, (h + 1) * dk)
            qh = q[:, sl].astype(mxu_dtype)
            kh = k[:, sl].astype(mxu_dtype)
            vh = v[:, sl].astype(mxu_dtype)
            s = lax.dot_general(qh, kh, (((1,), (1,)), ((), ())),
                                preferred_element_type=jnp.float32)
            if mask is not None:
                s = jnp.where(mask == 0, -1e9, s)   # matches masked_fill(mask==0)
            s = s - jnp.max(s, axis=-1, keepdims=True)
            p = jnp.exp(s)
            p = p * pl.reciprocal(jnp.sum(p, axis=-1, keepdims=True), approx=True)
            ctx_h = jnp.dot(p.astype(mxu_dtype), vh,
                            preferred_element_type=jnp.float32)
            # head-merge + output projection fused:
            #   concat_h(ctx_h) @ Wo == sum_h ctx_h @ Wo[h*dk:(h+1)*dk, :]
            out = out + jnp.dot(ctx_h.astype(mxu_dtype), wo[sl, :],
                                preferred_element_type=jnp.float32)
        return out + bo_ref[...]

    x = x_ref[0].astype(jnp.float32)      # (S, D)
    enc = enc_ref[0].astype(jnp.float32)  # (Se, D)

    # ---- block 1: self-attention + residual + LayerNorm ----
    qkv = mm(x, wqkv_s_ref) + bqkv_s_ref[...]                    # (S, 3D)
    sa = mha(qkv[:, :d], qkv[:, d:2 * d], qkv[:, 2 * d:],
             wo_s_ref, bo_s_ref, tgt_mask_ref)
    x = layer_norm(x + sa, g1_ref, be1_ref)

    # ---- block 2: cross-attention + residual + LayerNorm ----
    qc = mm(x, wq_c_ref) + bq_c_ref[...]                         # (S, D)
    kv = mm(enc, wkv_c_ref) + bkv_c_ref[...]                     # (Se, 2D)
    ca = mha(qc, kv[:, :d], kv[:, d:], wo_c_ref, bo_c_ref, src_mask_ref)
    x = layer_norm(x + ca, g2_ref, be2_ref)

    # ---- block 3: feed-forward + residual + LayerNorm ----
    h1 = jnp.maximum(mm(x, w1_ref) + b1_ref[...], 0.0)
    ff = mm(h1, w2_ref) + b2_ref[...]
    x = layer_norm(x + ff, g3_ref, be3_ref)

    o_ref[0] = x.astype(o_ref.dtype)


# -----------------------------------------------------------------------------
# Wrapper: builds the single fused pallas_call
# -----------------------------------------------------------------------------
def decoder_layer_forward(fused, x, enc_out, src_mask=None, tgt_mask=None, *,
                          n_heads, eps=1e-5):
    b, s, d = x.shape
    se = enc_out.shape[1]
    has_tgt = tgt_mask is not None
    has_src = src_mask is not None

    operands = [x, enc_out]
    in_specs = [pl.BlockSpec((1, s, d), lambda i: (i, 0, 0)),
                pl.BlockSpec((1, se, d), lambda i: (i, 0, 0))]

    # Masks stay in their head-independent broadcast form (B, Sq, Sk), int32.
    if has_tgt:
        tm = jnp.broadcast_to(jnp.asarray(tgt_mask), (b, 1, s, s))
        tm = tm.reshape(b, s, s).astype(jnp.int32)
        operands.append(tm)
        in_specs.append(pl.BlockSpec((1, s, s), lambda i: (i, 0, 0)))
    if has_src:
        sm = jnp.broadcast_to(jnp.asarray(src_mask), (b, 1, s, se))
        sm = sm.reshape(b, s, se).astype(jnp.int32)
        operands.append(sm)
        in_specs.append(pl.BlockSpec((1, s, se), lambda i: (i, 0, 0)))

    # Resident parameters (all 2-D, constant block index).
    for name in _PARAM_ORDER:
        w = fused[name]
        operands.append(w)
        in_specs.append(pl.BlockSpec(w.shape, lambda i: (0, 0)))

    kernel = functools.partial(
        _decoder_layer_kernel, n_heads=n_heads, eps=eps,
        has_tgt_mask=has_tgt, has_src_mask=has_src)

    return pl.pallas_call(
        kernel,
        out_shape=jax.ShapeDtypeStruct((b, s, d), x.dtype),
        grid=(b,),                      # B>=2 -> shards across v7x's two TCs
        in_specs=in_specs,
        out_specs=pl.BlockSpec((1, s, d), lambda i: (i, 0, 0)),
        compiler_params=pltpu.CompilerParams(
            dimension_semantics=("parallel",),
            vmem_limit_bytes=32 * 1024 * 1024,
        ),
    )(*operands)


# -----------------------------------------------------------------------------
# Parameter construction (mirrors nn.Linear / nn.LayerNorm defaults) and the
# one-time fusion transform (QKV concat + 1/sqrt(dk) folding + dtype cast).
# -----------------------------------------------------------------------------
def init_params(key, d_model, d_ff):
    def lin(k, fan_in, fan_out):
        k1, k2 = jax.random.split(k)
        bound = 1.0 / math.sqrt(fan_in)
        w = jax.random.uniform(k1, (fan_in, fan_out), jnp.float32, -bound, bound)
        b = jax.random.uniform(k2, (fan_out,), jnp.float32, -bound, bound)
        return w, b

    keys = jax.random.split(key, 10)

    def mha(ks):
        wq, bq = lin(ks[0], d_model, d_model)
        wk, bk = lin(ks[1], d_model, d_model)
        wv, bv = lin(ks[2], d_model, d_model)
        wo, bo = lin(ks[3], d_model, d_model)
        return dict(wq=wq, bq=bq, wk=wk, bk=bk, wv=wv, bv=bv, wo=wo, bo=bo)

    def ln():
        return dict(g=jnp.ones((d_model,), jnp.float32),
                    b=jnp.zeros((d_model,), jnp.float32))

    w1, b1 = lin(keys[8], d_model, d_ff)
    w2, b2 = lin(keys[9], d_ff, d_model)
    return dict(self_attn=mha(keys[0:4]), cross_attn=mha(keys[4:8]),
                ff=dict(w1=w1, b1=b1, w2=w2, b2=b2),
                norm1=ln(), norm2=ln(), norm3=ln())


def fuse_params(params, n_heads, *, matmul_dtype=jnp.float32):
    """One-time (host-side) transform: QKV concat, 1/sqrt(dk) folding into Wq,
    bias reshape to (1, N), optional bf16 cast of MXU weights (biases / LN in f32)."""
    sa, ca, ff = params["self_attn"], params["cross_attn"], params["ff"]
    d = sa["wq"].shape[0]
    assert d % n_heads == 0
    scale = 1.0 / math.sqrt(d // n_heads)
    c = lambda w: w.astype(matmul_dtype)
    r = lambda v: v.reshape(1, -1).astype(jnp.float32)
    return dict(
        wqkv_s=c(jnp.concatenate([sa["wq"] * scale, sa["wk"], sa["wv"]], axis=1)),
        bqkv_s=r(jnp.concatenate([sa["bq"] * scale, sa["bk"], sa["bv"]])),
        wo_s=c(sa["wo"]), bo_s=r(sa["bo"]),
        wq_c=c(ca["wq"] * scale), bq_c=r(ca["bq"] * scale),
        wkv_c=c(jnp.concatenate([ca["wk"], ca["wv"]], axis=1)),
        bkv_c=r(jnp.concatenate([ca["bk"], ca["bv"]])),
        wo_c=c(ca["wo"]), bo_c=r(ca["bo"]),
        w1=c(ff["w1"]), b1=r(ff["b1"]), w2=c(ff["w2"]), b2=r(ff["b2"]),
        g1=r(params["norm1"]["g"]), be1=r(params["norm1"]["b"]),
        g2=r(params["norm2"]["g"]), be2=r(params["norm2"]["b"]),
        g3=r(params["norm3"]["g"]), be3=r(params["norm3"]["b"]),
    )


# -----------------------------------------------------------------------------
# Pure-JAX reference (mirrors the PyTorch forward exactly)
# -----------------------------------------------------------------------------
def _ref_linear(x, w, b):
    return x @ w + b


def _ref_mha(p, q, k, v, n_heads, mask=None):
    bsz, sq, d = q.shape
    sk = k.shape[1]
    dk = d // n_heads
    qh = _ref_linear(q, p["wq"], p["bq"]).reshape(bsz, sq, n_heads, dk).transpose(0, 2, 1, 3)
    kh = _ref_linear(k, p["wk"], p["bk"]).reshape(bsz, sk, n_heads, dk).transpose(0, 2, 1, 3)
    vh = _ref_linear(v, p["wv"], p["bv"]).reshape(bsz, sk, n_heads, dk).transpose(0, 2, 1, 3)
    scores = jnp.einsum("bhqd,bhkd->bhqk", qh, kh) / math.sqrt(dk)
    if mask is not None:
        scores = jnp.where(mask == 0, -1e9, scores)
    attn = jax.nn.softmax(scores, axis=-1)
    ctx = jnp.einsum("bhqk,bhkd->bhqd", attn, vh)
    ctx = ctx.transpose(0, 2, 1, 3).reshape(bsz, sq, d)
    return _ref_linear(ctx, p["wo"], p["bo"])


def _ref_ln(x, g, b, eps=1e-5):
    m = x.mean(-1, keepdims=True)
    v = ((x - m) ** 2).mean(-1, keepdims=True)
    return (x - m) / jnp.sqrt(v + eps) * g + b


def _ref_decoder(params, x, enc_out, n_heads, src_mask=None, tgt_mask=None):
    x = _ref_ln(x + _ref_mha(params["self_attn"], x, x, x, n_heads, tgt_mask),
                params["norm1"]["g"], params["norm1"]["b"])
    x = _ref_ln(x + _ref_mha(params["cross_attn"], x, enc_out, enc_out, n_heads, src_mask),
                params["norm2"]["g"], params["norm2"]["b"])
    h = jnp.maximum(_ref_linear(x, params["ff"]["w1"], params["ff"]["b1"]), 0.0)
    h = _ref_linear(h, params["ff"]["w2"], params["ff"]["b2"])
    x = _ref_ln(x + h, params["norm3"]["g"], params["norm3"]["b"])
    return x


if __name__ == "__main__":
    # Small shapes consistent with the module: batch=2, seq=8, d_model=32,
    # n_heads=4 (d_k=8), d_ff=64.
    B, S, S_ENC, D, NH, DFF = 2, 8, 8, 32, 4, 64

    key = jax.random.PRNGKey(0)
    kx, kenc, kp = jax.random.split(key, 3)
    x = jax.random.normal(kx, (B, S, D), dtype=jnp.float32)
    enc_out = jax.random.normal(kenc, (B, S_ENC, D), dtype=jnp.float32)
    params = init_params(kp, D, DFF)

    # Typical transformer masks (causal tgt mask, padding src mask).
    tgt_mask = jnp.tril(jnp.ones((S, S), jnp.int32))[None, None]            # (1,1,S,S)
    lens = jnp.array([6, S_ENC])
    src_mask = (jnp.arange(S_ENC)[None, :] < lens[:, None]).astype(jnp.int32)[:, None, None, :]

    fwd = jax.jit(functools.partial(decoder_layer_forward, n_heads=NH))

    # --- f32 path, no masks (matches the original module defaults) ---
    fused_f32 = fuse_params(params, NH, matmul_dtype=jnp.float32)
    out = jax.block_until_ready(fwd(fused_f32, x, enc_out))
    ref = _ref_decoder(params, x, enc_out, NH)
    assert out.shape == (B, S, D)
    assert jnp.allclose(out, ref, atol=2e-2, rtol=2e-2), "f32 (no mask) mismatch"

    # --- f32 path, with masks ---
    out_m = jax.block_until_ready(fwd(fused_f32, x, enc_out, src_mask, tgt_mask))
    ref_m = _ref_decoder(params, x, enc_out, NH, src_mask=src_mask, tgt_mask=tgt_mask)
    assert jnp.allclose(out_m, ref_m, atol=2e-2, rtol=2e-2), "f32 (masked) mismatch"

    # --- bf16 MXU path (v6e/v7x style: bf16 operands, f32 accumulation) ---
    fused_bf16 = fuse_params(params, NH, matmul_dtype=jnp.bfloat16)
    out_bf16 = jax.block_until_ready(fwd(fused_bf16, x, enc_out, src_mask, tgt_mask))
    assert jnp.allclose(out_bf16, ref_m, atol=1e-1, rtol=1e-1), "bf16 mismatch"

    print("KERNEL_OK")
</pallas_src>

<mosaic_0001>
module attributes {stable_mosaic.version = 11 : i64} {
  func.func @_decoder_layer_kernel(%arg0: i32, %arg1: memref<1x8x32xf32, #tpu.memory_space<vmem>>, %arg2: memref<1x8x32xf32, #tpu.memory_space<vmem>>, %arg3: memref<32x96xf32, #tpu.memory_space<vmem>>, %arg4: memref<1x96xf32, #tpu.memory_space<vmem>>, %arg5: memref<32x32xf32, #tpu.memory_space<vmem>>, %arg6: memref<1x32xf32, #tpu.memory_space<vmem>>, %arg7: memref<32x32xf32, #tpu.memory_space<vmem>>, %arg8: memref<1x32xf32, #tpu.memory_space<vmem>>, %arg9: memref<32x64xf32, #tpu.memory_space<vmem>>, %arg10: memref<1x64xf32, #tpu.memory_space<vmem>>, %arg11: memref<32x32xf32, #tpu.memory_space<vmem>>, %arg12: memref<1x32xf32, #tpu.memory_space<vmem>>, %arg13: memref<32x64xf32, #tpu.memory_space<vmem>>, %arg14: memref<1x64xf32, #tpu.memory_space<vmem>>, %arg15: memref<64x32xf32, #tpu.memory_space<vmem>>, %arg16: memref<1x32xf32, #tpu.memory_space<vmem>>, %arg17: memref<1x32xf32, #tpu.memory_space<vmem>>, %arg18: memref<1x32xf32, #tpu.memory_space<vmem>>, %arg19: memref<1x32xf32, #tpu.memory_space<vmem>>, %arg20: memref<1x32xf32, #tpu.memory_space<vmem>>, %arg21: memref<1x32xf32, #tpu.memory_space<vmem>>, %arg22: memref<1x32xf32, #tpu.memory_space<vmem>>, %arg23: memref<1x8x32xf32, #tpu.memory_space<vmem>>) attributes {dimension_semantics = [#tpu.dimension_semantics<parallel>], iteration_bounds = array<i64: 2>, scalar_prefetch = 0 : i64, scratch_operands = 0 : i64, tpu.core_type = #tpu.core_type<tc>, window_params = [{transform_indices = @transform_0, window_bounds = array<i64: 1, 8, 32>}, {transform_indices = @transform_1, window_bounds = array<i64: 1, 8, 32>}, {pipeline_mode = #tpu.pipeline_mode<synchronous>, transform_indices = @transform_2, window_bounds = array<i64: 32, 96>}, {pipeline_mode = #tpu.pipeline_mode<synchronous>, transform_indices = @transform_3, window_bounds = array<i64: 1, 96>}, {pipeline_mode = #tpu.pipeline_mode<synchronous>, transform_indices = @transform_4, window_bounds = array<i64: 32, 32>}, {pipeline_mode = #tpu.pipeline_mode<synchronous>, transform_indices = @transform_5, window_bounds = array<i64: 1, 32>}, {pipeline_mode = #tpu.pipeline_mode<synchronous>, transform_indices = @transform_6, window_bounds = array<i64: 32, 32>}, {pipeline_mode = #tpu.pipeline_mode<synchronous>, transform_indices = @transform_7, window_bounds = array<i64: 1, 32>}, {pipeline_mode = #tpu.pipeline_mode<synchronous>, transform_indices = @transform_8, window_bounds = array<i64: 32, 64>}, {pipeline_mode = #tpu.pipeline_mode<synchronous>, transform_indices = @transform_9, window_bounds = array<i64: 1, 64>}, {pipeline_mode = #tpu.pipeline_mode<synchronous>, transform_indices = @transform_10, window_bounds = array<i64: 32, 32>}, {pipeline_mode = #tpu.pipeline_mode<synchronous>, transform_indices = @transform_11, window_bounds = array<i64: 1, 32>}, {pipeline_mode = #tpu.pipeline_mode<synchronous>, transform_indices = @transform_12, window_bounds = array<i64: 32, 64>}, {pipeline_mode = #tpu.pipeline_mode<synchronous>, transform_indices = @transform_13, window_bounds = array<i64: 1, 64>}, {pipeline_mode = #tpu.pipeline_mode<synchronous>, transform_indices = @transform_14, window_bounds = array<i64: 64, 32>}, {pipeline_mode = #tpu.pipeline_mode<synchronous>, transform_indices = @transform_15, window_bounds = array<i64: 1, 32>}, {pipeline_mode = #tpu.pipeline_mode<synchronous>, transform_indices = @transform_16, window_bounds = array<i64: 1, 32>}, {pipeline_mode = #tpu.pipeline_mode<synchronous>, transform_indices = @transform_17, window_bounds = array<i64: 1, 32>}, {pipeline_mode = #tpu.pipeline_mode<synchronous>, transform_indices = @transform_18, window_bounds = array<i64: 1, 32>}, {pipeline_mode = #tpu.pipeline_mode<synchronous>, transform_indices = @transform_19, window_bounds = array<i64: 1, 32>}, {pipeline_mode = #tpu.pipeline_mode<synchronous>, transform_indices = @transform_20, window_bounds = array<i64: 1, 32>}, {pipeline_mode = #tpu.pipeline_mode<synchronous>, transform_indices = @transform_21, window_bounds = array<i64: 1, 32>}, {transform_indices = @transform_22, window_bounds = array<i64: 1, 8, 32>}]} {
    %c0 = arith.constant 0 : index
    %c0_0 = arith.constant 0 : index
    %c0_1 = arith.constant 0 : index
    %0 = vector.load %arg1[%c0, %c0_0, %c0_1] : memref<1x8x32xf32, #tpu.memory_space<vmem>>, vector<1x8x32xf32>
    %1 = vector.shape_cast %0 : vector<1x8x32xf32> to vector<8x32xf32>
    %c0_2 = arith.constant 0 : index
    %c0_3 = arith.constant 0 : index
    %c0_4 = arith.constant 0 : index
    %2 = vector.load %arg2[%c0_2, %c0_3, %c0_4] : memref<1x8x32xf32, #tpu.memory_space<vmem>>, vector<1x8x32xf32>
    %3 = vector.shape_cast %2 : vector<1x8x32xf32> to vector<8x32xf32>
    %c0_5 = arith.constant 0 : index
    %c0_6 = arith.constant 0 : index
    %4 = vector.load %arg3[%c0_5, %c0_6] : memref<32x96xf32, #tpu.memory_space<vmem>>, vector<32x96xf32>
    %cst = arith.constant dense<0.000000e+00> : vector<8x96xf32>
    %5 = tpu.matmul %1, %4, %cst {dimension_numbers = #tpu.dot_dimension_numbers<[1], [0], [0], [1], [0, 0, 1, 1], [], []>} : vector<8x32xf32>, vector<32x96xf32>, vector<8x96xf32> -> vector<8x96xf32>
    %c0_7 = arith.constant 0 : index
    %c0_8 = arith.constant 0 : index
    %6 = vector.load %arg4[%c0_7, %c0_8] : memref<1x96xf32, #tpu.memory_space<vmem>>, vector<1x96xf32>
    %7 = vector.broadcast %6 : vector<1x96xf32> to vector<8x96xf32>
    %8 = arith.addf %5, %7 : vector<8x96xf32>
    %9 = vector.extract_strided_slice %8 {offsets = [0, 0], sizes = [8, 32], strides = [1, 1]} : vector<8x96xf32> to vector<8x32xf32>
    %10 = vector.extract_strided_slice %8 {offsets = [0, 32], sizes = [8, 32], strides = [1, 1]} : vector<8x96xf32> to vector<8x32xf32>
    %11 = vector.extract_strided_slice %8 {offsets = [0, 64], sizes = [8, 32], strides = [1, 1]} : vector<8x96xf32> to vector<8x32xf32>
    %c0_9 = arith.constant 0 : index
    %c0_10 = arith.constant 0 : index
    %12 = vector.load %arg5[%c0_9, %c0_10] : memref<32x32xf32, #tpu.memory_space<vmem>>, vector<32x32xf32>
    %cst_11 = arith.constant 0.000000e+00 : f32
    %13 = vector.broadcast %cst_11 : f32 to vector<8x32xf32>
    %14 = vector.extract_strided_slice %9 {offsets = [0, 0], sizes = [8, 8], strides = [1, 1]} : vector<8x32xf32> to vector<8x8xf32>
    %15 = vector.extract_strided_slice %10 {offsets = [0, 0], sizes = [8, 8], strides = [1, 1]} : vector<8x32xf32> to vector<8x8xf32>
    %16 = vector.extract_strided_slice %11 {offsets = [0, 0], sizes = [8, 8], strides = [1, 1]} : vector<8x32xf32> to vector<8x8xf32>
    %cst_12 = arith.constant dense<0.000000e+00> : vector<8x8xf32>
    %17 = tpu.matmul %14, %15, %cst_12 {dimension_numbers = #tpu.dot_dimension_numbers<[1], [1], [0], [0], [0, 0, 1, 0], [], []>} : vector<8x8xf32>, vector<8x8xf32>, vector<8x8xf32> -> vector<8x8xf32>
    %cst_13 = arith.constant dense<0xFF800000> : vector<8xf32>
    %18 = vector.multi_reduction <maximumf>, %17, %cst_13 [1] : vector<8x8xf32> to vector<8xf32>
    %19 = vector.shape_cast %18 : vector<8xf32> to vector<8x1xf32>
    %20 = vector.broadcast %19 : vector<8x1xf32> to vector<8x8xf32>
    %21 = arith.subf %17, %20 : vector<8x8xf32>
    %22 = math.exp %21 : vector<8x8xf32>
    %cst_14 = arith.constant dense<0.000000e+00> : vector<8xf32>
    %23 = vector.multi_reduction <add>, %22, %cst_14 [1] : vector<8x8xf32> to vector<8xf32>
    %24 = vector.shape_cast %23 : vector<8xf32> to vector<8x1xf32>
    %25 = tpu.reciprocal %24 {approx = true} : vector<8x1xf32> -> vector<8x1xf32>
    %26 = vector.broadcast %25 : vector<8x1xf32> to vector<8x8xf32>
    %27 = arith.mulf %22, %26 : vector<8x8xf32>
    %cst_15 = arith.constant dense<0.000000e+00> : vector<8x8xf32>
    %28 = tpu.matmul %27, %16, %cst_15 {dimension_numbers = #tpu.dot_dimension_numbers<[1], [0], [0], [1], [0, 0, 1, 1], [], []>} : vector<8x8xf32>, vector<8x8xf32>, vector<8x8xf32> -> vector<8x8xf32>
    %29 = vector.extract_strided_slice %12 {offsets = [0, 0], sizes = [8, 32], strides = [1, 1]} : vector<32x32xf32> to vector<8x32xf32>
    %cst_16 = arith.constant dense<0.000000e+00> : vector<8x32xf32>
    %30 = tpu.matmul %28, %29, %cst_16 {dimension_numbers = #tpu.dot_dimension_numbers<[1], [0], [0], [1], [0, 0, 1, 1], [], []>} : vector<8x8xf32>, vector<8x32xf32>, vector<8x32xf32> -> vector<8x32xf32>
    %31 = arith.addf %13, %30 : vector<8x32xf32>
    %32 = vector.extract_strided_slice %9 {offsets = [0, 8], sizes = [8, 8], strides = [1, 1]} : vector<8x32xf32> to vector<8x8xf32>
    %33 = vector.extract_strided_slice %10 {offsets = [0, 8], sizes = [8, 8], strides = [1, 1]} : vector<8x32xf32> to vector<8x8xf32>
    %34 = vector.extract_strided_slice %11 {offsets = [0, 8], sizes = [8, 8], strides = [1, 1]} : vector<8x32xf32> to vector<8x8xf32>
    %cst_17 = arith.constant dense<0.000000e+00> : vector<8x8xf32>
    %35 = tpu.matmul %32, %33, %cst_17 {dimension_numbers = #tpu.dot_dimension_numbers<[1], [1], [0], [0], [0, 0, 1, 0], [], []>} : vector<8x8xf32>, vector<8x8xf32>, vector<8x8xf32> -> vector<8x8xf32>
    %cst_18 = arith.constant dense<0xFF800000> : vector<8xf32>
    %36 = vector.multi_reduction <maximumf>, %35, %cst_18 [1] : vector<8x8xf32> to vector<8xf32>
    %37 = vector.shape_cast %36 : vector<8xf32> to vector<8x1xf32>
    %38 = vector.broadcast %37 : vector<8x1xf32> to vector<8x8xf32>
    %39 = arith.subf %35, %38 : vector<8x8xf32>
    %40 = math.exp %39 : vector<8x8xf32>
    %cst_19 = arith.constant dense<0.000000e+00> : vector<8xf32>
    %41 = vector.multi_reduction <add>, %40, %cst_19 [1] : vector<8x8xf32> to vector<8xf32>
    %42 = vector.shape_cast %41 : vector<8xf32> to vector<8x1xf32>
    %43 = tpu.reciprocal %42 {approx = true} : vector<8x1xf32> -> vector<8x1xf32>
    %44 = vector.broadcast %43 : vector<8x1xf32> to vector<8x8xf32>
    %45 = arith.mulf %40, %44 : vector<8x8xf32>
    %cst_20 = arith.constant dense<0.000000e+00> : vector<8x8xf32>
    %46 = tpu.matmul %45, %34, %cst_20 {dimension_numbers = #tpu.dot_dimension_numbers<[1], [0], [0], [1], [0, 0, 1, 1], [], []>} : vector<8x8xf32>, vector<8x8xf32>, vector<8x8xf32> -> vector<8x8xf32>
    %47 = vector.extract_strided_slice %12 {offsets = [8, 0], sizes = [8, 32], strides = [1, 1]} : vector<32x32xf32> to vector<8x32xf32>
    %cst_21 = arith.constant dense<0.000000e+00> : vector<8x32xf32>
    %48 = tpu.matmul %46, %47, %cst_21 {dimension_numbers = #tpu.dot_dimension_numbers<[1], [0], [0], [1], [0, 0, 1, 1], [], []>} : vector<8x8xf32>, vector<8x32xf32>, vector<8x32xf32> -> vector<8x32xf32>
    %49 = arith.addf %31, %48 : vector<8x32xf32>
    %50 = vector.extract_strided_slice %9 {offsets = [0, 16], sizes = [8, 8], strides = [1, 1]} : vector<8x32xf32> to vector<8x8xf32>
    %51 = vector.extract_strided_slice %10 {offsets = [0, 16], sizes = [8, 8], strides = [1, 1]} : vector<8x32xf32> to vector<8x8xf32>
    %52 = vector.extract_strided_slice %11 {offsets = [0, 16], sizes = [8, 8], strides = [1, 1]} : vector<8x32xf32> to vector<8x8xf32>
    %cst_22 = arith.constant dense<0.000000e+00> : vector<8x8xf32>
    %53 = tpu.matmul %50, %51, %cst_22 {dimension_numbers = #tpu.dot_dimension_numbers<[1], [1], [0], [0], [0, 0, 1, 0], [], []>} : vector<8x8xf32>, vector<8x8xf32>, vector<8x8xf32> -> vector<8x8xf32>
    %cst_23 = arith.constant dense<0xFF800000> : vector<8xf32>
    %54 = vector.multi_reduction <maximumf>, %53, %cst_23 [1] : vector<8x8xf32> to vector<8xf32>
    %55 = vector.shape_cast %54 : vector<8xf32> to vector<8x1xf32>
    %56 = vector.broadcast %55 : vector<8x1xf32> to vector<8x8xf32>
    %57 = arith.subf %53, %56 : vector<8x8xf32>
    %58 = math.exp %57 : vector<8x8xf32>
    %cst_24 = arith.constant dense<0.000000e+00> : vector<8xf32>
    %59 = vector.multi_reduction <add>, %58, %cst_24 [1] : vector<8x8xf32> to vector<8xf32>
    %60 = vector.shape_cast %59 : vector<8xf32> to vector<8x1xf32>
    %61 = tpu.reciprocal %60 {approx = true} : vector<8x1xf32> -> vector<8x1xf32>
    %62 = vector.broadcast %61 : vector<8x1xf32> to vector<8x8xf32>
    %63 = arith.mulf %58, %62 : vector<8x8xf32>
    %cst_25 = arith.constant dense<0.000000e+00> : vector<8x8xf32>
    %64 = tpu.matmul %63, %52, %cst_25 {dimension_numbers = #tpu.dot_dimension_numbers<[1], [0], [0], [1], [0, 0, 1, 1], [], []>} : vector<8x8xf32>, vector<8x8xf32>, vector<8x8xf32> -> vector<8x8xf32>
    %65 = vector.extract_strided_slice %12 {offsets = [16, 0], sizes = [8, 32], strides = [1, 1]} : vector<32x32xf32> to vector<8x32xf32>
    %cst_26 = arith.constant dense<0.000000e+00> : vector<8x32xf32>
    %66 = tpu.matmul %64, %65, %cst_26 {dimension_numbers = #tpu.dot_dimension_numbers<[1], [0], [0], [1], [0, 0, 1, 1], [], []>} : vector<8x8xf32>, vector<8x32xf32>, vector<8x32xf32> -> vector<8x32xf32>
    %67 = arith.addf %49, %66 : vector<8x32xf32>
    %68 = vector.extract_strided_slice %9 {offsets = [0, 24], sizes = [8, 8], strides = [1, 1]} : vector<8x32xf32> to vector<8x8xf32>
    %69 = vector.extract_strided_slice %10 {offsets = [0, 24], sizes = [8, 8], strides = [1, 1]} : vector<8x32xf32> to vector<8x8xf32>
    %70 = vector.extract_strided_slice %11 {offsets = [0, 24], sizes = [8, 8], strides = [1, 1]} : vector<8x32xf32> to vector<8x8xf32>
    %cst_27 = arith.constant dense<0.000000e+00> : vector<8x8xf32>
    %71 = tpu.matmul %68, %69, %cst_27 {dimension_numbers = #tpu.dot_dimension_numbers<[1], [1], [0], [0], [0, 0, 1, 0], [], []>} : vector<8x8xf32>, vector<8x8xf32>, vector<8x8xf32> -> vector<8x8xf32>
    %cst_28 = arith.constant dense<0xFF800000> : vector<8xf32>
    %72 = vector.multi_reduction <maximumf>, %71, %cst_28 [1] : vector<8x8xf32> to vector<8xf32>
    %73 = vector.shape_cast %72 : vector<8xf32> to vector<8x1xf32>
    %74 = vector.broadcast %73 : vector<8x1xf32> to vector<8x8xf32>
    %75 = arith.subf %71, %74 : vector<8x8xf32>
    %76 = math.exp %75 : vector<8x8xf32>
    %cst_29 = arith.constant dense<0.000000e+00> : vector<8xf32>
    %77 = vector.multi_reduction <add>, %76, %cst_29 [1] : vector<8x8xf32> to vector<8xf32>
    %78 = vector.shape_cast %77 : vector<8xf32> to vector<8x1xf32>
    %79 = tpu.reciprocal %78 {approx = true} : vector<8x1xf32> -> vector<8x1xf32>
    %80 = vector.broadcast %79 : vector<8x1xf32> to vector<8x8xf32>
    %81 = arith.mulf %76, %80 : vector<8x8xf32>
    %cst_30 = arith.constant dense<0.000000e+00> : vector<8x8xf32>
    %82 = tpu.matmul %81, %70, %cst_30 {dimension_numbers = #tpu.dot_dimension_numbers<[1], [0], [0], [1], [0, 0, 1, 1], [], []>} : vector<8x8xf32>, vector<8x8xf32>, vector<8x8xf32> -> vector<8x8xf32>
    %83 = vector.extract_strided_slice %12 {offsets = [24, 0], sizes = [8, 32], strides = [1, 1]} : vector<32x32xf32> to vector<8x32xf32>
    %cst_31 = arith.constant dense<0.000000e+00> : vector<8x32xf32>
    %84 = tpu.matmul %82, %83, %cst_31 {dimension_numbers = #tpu.dot_dimension_numbers<[1], [0], [0], [1], [0, 0, 1, 1], [], []>} : vector<8x8xf32>, vector<8x32xf32>, vector<8x32xf32> -> vector<8x32xf32>
    %85 = arith.addf %67, %84 : vector<8x32xf32>
    %c0_32 = arith.constant 0 : index
    %c0_33 = arith.constant 0 : index
    %86 = vector.load %arg6[%c0_32, %c0_33] : memref<1x32xf32, #tpu.memory_space<vmem>>, vector<1x32xf32>
    %87 = vector.broadcast %86 : vector<1x32xf32> to vector<8x32xf32>
    %88 = arith.addf %85, %87 : vector<8x32xf32>
    %89 = arith.addf %1, %88 : vector<8x32xf32>
    %cst_34 = arith.constant dense<0.000000e+00> : vector<8xf32>
    %90 = vector.multi_reduction <add>, %89, %cst_34 [1] : vector<8x32xf32> to vector<8xf32>
    %91 = vector.shape_cast %90 : vector<8xf32> to vector<8x1xf32>
    %cst_35 = arith.constant 3.200000e+01 : f32
    %92 = vector.broadcast %cst_35 : f32 to vector<8x1xf32>
    %93 = arith.divf %91, %92 : vector<8x1xf32>
    %94 = vector.broadcast %93 : vector<8x1xf32> to vector<8x32xf32>
    %95 = arith.subf %89, %94 : vector<8x32xf32>
    %96 = arith.mulf %95, %95 : vector<8x32xf32>
    %cst_36 = arith.constant dense<0.000000e+00> : vector<8xf32>
    %97 = vector.multi_reduction <add>, %96, %cst_36 [1] : vector<8x32xf32> to vector<8xf32>
    %98 = vector.shape_cast %97 : vector<8xf32> to vector<8x1xf32>
    %cst_37 = arith.constant 3.200000e+01 : f32
    %99 = vector.broadcast %cst_37 : f32 to vector<8x1xf32>
    %100 = arith.divf %98, %99 : vector<8x1xf32>
    %cst_38 = arith.constant 9.99999974E-6 : f32
    %101 = vector.broadcast %cst_38 : f32 to vector<8x1xf32>
    %102 = arith.addf %100, %101 : vector<8x1xf32>
    %103 = math.rsqrt %102 : vector<8x1xf32>
    %104 = vector.broadcast %103 : vector<8x1xf32> to vector<8x32xf32>
    %105 = arith.mulf %95, %104 : vector<8x32xf32>
    %c0_39 = arith.constant 0 : index
    %c0_40 = arith.constant 0 : index
    %106 = vector.load %arg17[%c0_39, %c0_40] : memref<1x32xf32, #tpu.memory_space<vmem>>, vector<1x32xf32>
    %107 = vector.broadcast %106 : vector<1x32xf32> to vector<8x32xf32>
    %108 = arith.mulf %105, %107 : vector<8x32xf32>
    %c0_41 = arith.constant 0 : index
    %c0_42 = arith.constant 0 : index
    %109 = vector.load %arg18[%c0_41, %c0_42] : memref<1x32xf32, #tpu.memory_space<vmem>>, vector<1x32xf32>
    %110 = vector.broadcast %109 : vector<1x32xf32> to vector<8x32xf32>
    %111 = arith.addf %108, %110 : vector<8x32xf32>
    %c0_43 = arith.constant 0 : index
    %c0_44 = arith.constant 0 : index
    %112 = vector.load %arg7[%c0_43, %c0_44] : memref<32x32xf32, #tpu.memory_space<vmem>>, vector<32x32xf32>
    %cst_45 = arith.constant dense<0.000000e+00> : vector<8x32xf32>
    %113 = tpu.matmul %111, %112, %cst_45 {dimension_numbers = #tpu.dot_dimension_numbers<[1], [0], [0], [1], [0, 0, 1, 1], [], []>} : vector<8x32xf32>, vector<32x32xf32>, vector<8x32xf32> -> vector<8x32xf32>
    %c0_46 = arith.constant 0 : index
    %c0_47 = arith.constant 0 : index
    %114 = vector.load %arg8[%c0_46, %c0_47] : memref<1x32xf32, #tpu.memory_space<vmem>>, vector<1x32xf32>
    %115 = vector.broadcast %114 : vector<1x32xf32> to vector<8x32xf32>
    %116 = arith.addf %113, %115 : vector<8x32xf32>
    %c0_48 = arith.constant 0 : index
    %c0_49 = arith.constant 0 : index
    %117 = vector.load %arg9[%c0_48, %c0_49] : memref<32x64xf32, #tpu.memory_space<vmem>>, vector<32x64xf32>
    %cst_50 = arith.constant dense<0.000000e+00> : vector<8x64xf32>
    %118 = tpu.matmul %3, %117, %cst_50 {dimension_numbers = #tpu.dot_dimension_numbers<[1], [0], [0], [1], [0, 0, 1, 1], [], []>} : vector<8x32xf32>, vector<32x64xf32>, vector<8x64xf32> -> vector<8x64xf32>
    %c0_51 = arith.constant 0 : index
    %c0_52 = arith.constant 0 : index
    %119 = vector.load %arg10[%c0_51, %c0_52] : memref<1x64xf32, #tpu.memory_space<vmem>>, vector<1x64xf32>
    %120 = vector.broadcast %119 : vector<1x64xf32> to vector<8x64xf32>
    %121 = arith.addf %118, %120 : vector<8x64xf32>
    %122 = vector.extract_strided_slice %121 {offsets = [0, 0], sizes = [8, 32], strides = [1, 1]} : vector<8x64xf32> to vector<8x32xf32>
    %123 = vector.extract_strided_slice %121 {offsets = [0, 32], sizes = [8, 32], strides = [1, 1]} : vector<8x64xf32> to vector<8x32xf32>
    %c0_53 = arith.constant 0 : index
    %c0_54 = arith.constant 0 : index
    %124 = vector.load %arg11[%c0_53, %c0_54] : memref<32x32xf32, #tpu.memory_space<vmem>>, vector<32x32xf32>
    %cst_55 = arith.constant 0.000000e+00 : f32
    %125 = vector.broadcast %cst_55 : f32 to vector<8x32xf32>
    %126 = vector.extract_strided_slice %116 {offsets = [0, 0], sizes = [8, 8], strides = [1, 1]} : vector<8x32xf32> to vector<8x8xf32>
    %127 = vector.extract_strided_slice %122 {offsets = [0, 0], sizes = [8, 8], strides = [1, 1]} : vector<8x32xf32> to vector<8x8xf32>
    %128 = vector.extract_strided_slice %123 {offsets = [0, 0], sizes = [8, 8], strides = [1, 1]} : vector<8x32xf32> to vector<8x8xf32>
    %cst_56 = arith.constant dense<0.000000e+00> : vector<8x8xf32>
    %129 = tpu.matmul %126, %127, %cst_56 {dimension_numbers = #tpu.dot_dimension_numbers<[1], [1], [0], [0], [0, 0, 1, 0], [], []>} : vector<8x8xf32>, vector<8x8xf32>, vector<8x8xf32> -> vector<8x8xf32>
    %cst_57 = arith.constant dense<0xFF800000> : vector<8xf32>
    %130 = vector.multi_reduction <maximumf>, %129, %cst_57 [1] : vector<8x8xf32> to vector<8xf32>
    %131 = vector.shape_cast %130 : vector<8xf32> to vector<8x1xf32>
    %132 = vector.broadcast %131 : vector<8x1xf32> to vector<8x8xf32>
    %133 = arith.subf %129, %132 : vector<8x8xf32>
    %134 = math.exp %133 : vector<8x8xf32>
    %cst_58 = arith.constant dense<0.000000e+00> : vector<8xf32>
    %135 = vector.multi_reduction <add>, %134, %cst_58 [1] : vector<8x8xf32> to vector<8xf32>
    %136 = vector.shape_cast %135 : vector<8xf32> to vector<8x1xf32>
    %137 = tpu.reciprocal %136 {approx = true} : vector<8x1xf32> -> vector<8x1xf32>
    %138 = vector.broadcast %137 : vector<8x1xf32> to vector<8x8xf32>
    %139 = arith.mulf %134, %138 : vector<8x8xf32>
    %cst_59 = arith.constant dense<0.000000e+00> : vector<8x8xf32>
    %140 = tpu.matmul %139, %128, %cst_59 {dimension_numbers = #tpu.dot_dimension_numbers<[1], [0], [0], [1], [0, 0, 1, 1], [], []>} : vector<8x8xf32>, vector<8x8xf32>, vector<8x8xf32> -> vector<8x8xf32>
    %141 = vector.extract_strided_slice %124 {offsets = [0, 0], sizes = [8, 32], strides = [1, 1]} : vector<32x32xf32> to vector<8x32xf32>
    %cst_60 = arith.constant dense<0.000000e+00> : vector<8x32xf32>
    %142 = tpu.matmul %140, %141, %cst_60 {dimension_numbers = #tpu.dot_dimension_numbers<[1], [0], [0], [1], [0, 0, 1, 1], [], []>} : vector<8x8xf32>, vector<8x32xf32>, vector<8x32xf32> -> vector<8x32xf32>
    %143 = arith.addf %125, %142 : vector<8x32xf32>
    %144 = vector.extract_strided_slice %116 {offsets = [0, 8], sizes = [8, 8], strides = [1, 1]} : vector<8x32xf32> to vector<8x8xf32>
    %145 = vector.extract_strided_slice %122 {offsets = [0, 8], sizes = [8, 8], strides = [1, 1]} : vector<8x32xf32> to vector<8x8xf32>
    %146 = vector.extract_strided_slice %123 {offsets = [0, 8], sizes = [8, 8], strides = [1, 1]} : vector<8x32xf32> to vector<8x8xf32>
    %cst_61 = arith.constant dense<0.000000e+00> : vector<8x8xf32>
    %147 = tpu.matmul %144, %145, %cst_61 {dimension_numbers = #tpu.dot_dimension_numbers<[1], [1], [0], [0], [0, 0, 1, 0], [], []>} : vector<8x8xf32>, vector<8x8xf32>, vector<8x8xf32> -> vector<8x8xf32>
    %cst_62 = arith.constant dense<0xFF800000> : vector<8xf32>
    %148 = vector.multi_reduction <maximumf>, %147, %cst_62 [1] : vector<8x8xf32> to vector<8xf32>
    %149 = vector.shape_cast %148 : vector<8xf32> to vector<8x1xf32>
    %150 = vector.broadcast %149 : vector<8x1xf32> to vector<8x8xf32>
    %151 = arith.subf %147, %150 : vector<8x8xf32>
    %152 = math.exp %151 : vector<8x8xf32>
    %cst_63 = arith.constant dense<0.000000e+00> : vector<8xf32>
    %153 = vector.multi_reduction <add>, %152, %cst_63 [1] : vector<8x8xf32> to vector<8xf32>
    %154 = vector.shape_cast %153 : vector<8xf32> to vector<8x1xf32>
    %155 = tpu.reciprocal %154 {approx = true} : vector<8x1xf32> -> vector<8x1xf32>
    %156 = vector.broadcast %155 : vector<8x1xf32> to vector<8x8xf32>
    %157 = arith.mulf %152, %156 : vector<8x8xf32>
    %cst_64 = arith.constant dense<0.000000e+00> : vector<8x8xf32>
    %158 = tpu.matmul %157, %146, %cst_64 {dimension_numbers = #tpu.dot_dimension_numbers<[1], [0], [0], [1], [0, 0, 1, 1], [], []>} : vector<8x8xf32>, vector<8x8xf32>, vector<8x8xf32> -> vector<8x8xf32>
    %159 = vector.extract_strided_slice %124 {offsets = [8, 0], sizes = [8, 32], strides = [1, 1]} : vector<32x32xf32> to vector<8x32xf32>
    %cst_65 = arith.constant dense<0.000000e+00> : vector<8x32xf32>
    %160 = tpu.matmul %158, %159, %cst_65 {dimension_numbers = #tpu.dot_dimension_numbers<[1], [0], [0], [1], [0, 0, 1, 1], [], []>} : vector<8x8xf32>, vector<8x32xf32>, vector<8x32xf32> -> vector<8x32xf32>
    %161 = arith.addf %143, %160 : vector<8x32xf32>
    %162 = vector.extract_strided_slice %116 {offsets = [0, 16], sizes = [8, 8], strides = [1, 1]} : vector<8x32xf32> to vector<8x8xf32>
    %163 = vector.extract_strided_slice %122 {offsets = [0, 16], sizes = [8, 8], strides = [1, 1]} : vector<8x32xf32> to vector<8x8xf32>
    %164 = vector.extract_strided_slice %123 {offsets = [0, 16], sizes = [8, 8], strides = [1, 1]} : vector<8x32xf32> to vector<8x8xf32>
    %cst_66 = arith.constant dense<0.000000e+00> : vector<8x8xf32>
    %165 = tpu.matmul %162, %163, %cst_66 {dimension_numbers = #tpu.dot_dimension_numbers<[1], [1], [0], [0], [0, 0, 1, 0], [], []>} : vector<8x8xf32>, vector<8x8xf32>, vector<8x8xf32> -> vector<8x8xf32>
    %cst_67 = arith.constant dense<0xFF800000> : vector<8xf32>
    %166 = vector.multi_reduction <maximumf>, %165, %cst_67 [1] : vector<8x8xf32> to vector<8xf32>
    %167 = vector.shape_cast %166 : vector<8xf32> to vector<8x1xf32>
    %168 = vector.broadcast %167 : vector<8x1xf32> to vector<8x8xf32>
    %169 = arith.subf %165, %168 : vector<8x8xf32>
    %170 = math.exp %169 : vector<8x8xf32>
    %cst_68 = arith.constant dense<0.000000e+00> : vector<8xf32>
    %171 = vector.multi_reduction <add>, %170, %cst_68 [1] : vector<8x8xf32> to vector<8xf32>
    %172 = vector.shape_cast %171 : vector<8xf32> to vector<8x1xf32>
    %173 = tpu.reciprocal %172 {approx = true} : vector<8x1xf32> -> vector<8x1xf32>
    %174 = vector.broadcast %173 : vector<8x1xf32> to vector<8x8xf32>
    %175 = arith.mulf %170, %174 : vector<8x8xf32>
    %cst_69 = arith.constant dense<0.000000e+00> : vector<8x8xf32>
    %176 = tpu.matmul %175, %164, %cst_69 {dimension_numbers = #tpu.dot_dimension_numbers<[1], [0], [0], [1], [0, 0, 1, 1], [], []>} : vector<8x8xf32>, vector<8x8xf32>, vector<8x8xf32> -> vector<8x8xf32>
    %177 = vector.extract_strided_slice %124 {offsets = [16, 0], sizes = [8, 32], strides = [1, 1]} : vector<32x32xf32> to vector<8x32xf32>
    %cst_70 = arith.constant dense<0.000000e+00> : vector<8x32xf32>
    %178 = tpu.matmul %176, %177, %cst_70 {dimension_numbers = #tpu.dot_dimension_numbers<[1], [0], [0], [1], [0, 0, 1, 1], [], []>} : vector<8x8xf32>, vector<8x32xf32>, vector<8x32xf32> -> vector<8x32xf32>
    %179 = arith.addf %161, %178 : vector<8x32xf32>
    %180 = vector.extract_strided_slice %116 {offsets = [0, 24], sizes = [8, 8], strides = [1, 1]} : vector<8x32xf32> to vector<8x8xf32>
    %181 = vector.extract_strided_slice %122 {offsets = [0, 24], sizes = [8, 8], strides = [1, 1]} : vector<8x32xf32> to vector<8x8xf32>
    %182 = vector.extract_strided_slice %123 {offsets = [0, 24], sizes = [8, 8], strides = [1, 1]} : vector<8x32xf32> to vector<8x8xf32>
    %cst_71 = arith.constant dense<0.000000e+00> : vector<8x8xf32>
    %183 = tpu.matmul %180, %181, %cst_71 {dimension_numbers = #tpu.dot_dimension_numbers<[1], [1], [0], [0], [0, 0, 1, 0], [], []>} : vector<8x8xf32>, vector<8x8xf32>, vector<8x8xf32> -> vector<8x8xf32>
    %cst_72 = arith.constant dense<0xFF800000> : vector<8xf32>
    %184 = vector.multi_reduction <maximumf>, %183, %cst_72 [1] : vector<8x8xf32> to vector<8xf32>
    %185 = vector.shape_cast %184 : vector<8xf32> to vector<8x1xf32>
    %186 = vector.broadcast %185 : vector<8x1xf32> to vector<8x8xf32>
    %187 = arith.subf %183, %186 : vector<8x8xf32>
    %188 = math.exp %187 : vector<8x8xf32>
    %cst_73 = arith.constant dense<0.000000e+00> : vector<8xf32>
    %189 = vector.multi_reduction <add>, %188, %cst_73 [1] : vector<8x8xf32> to vector<8xf32>
    %190 = vector.shape_cast %189 : vector<8xf32> to vector<8x1xf32>
    %191 = tpu.reciprocal %190 {approx = true} : vector<8x1xf32> -> vector<8x1xf32>
    %192 = vector.broadcast %191 : vector<8x1xf32> to vector<8x8xf32>
    %193 = arith.mulf %188, %192 : vector<8x8xf32>
    %cst_74 = arith.constant dense<0.000000e+00> : vector<8x8xf32>
    %194 = tpu.matmul %193, %182, %cst_74 {dimension_numbers = #tpu.dot_dimension_numbers<[1], [0], [0], [1], [0, 0, 1, 1], [], []>} : vector<8x8xf32>, vector<8x8xf32>, vector<8x8xf32> -> vector<8x8xf32>
    %195 = vector.extract_strided_slice %124 {offsets = [24, 0], sizes = [8, 32], strides = [1, 1]} : vector<32x32xf32> to vector<8x32xf32>
    %cst_75 = arith.constant dense<0.000000e+00> : vector<8x32xf32>
    %196 = tpu.matmul %194, %195, %cst_75 {dimension_numbers = #tpu.dot_dimension_numbers<[1], [0], [0], [1], [0, 0, 1, 1], [], []>} : vector<8x8xf32>, vector<8x32xf32>, vector<8x32xf32> -> vector<8x32xf32>
    %197 = arith.addf %179, %196 : vector<8x32xf32>
    %c0_76 = arith.constant 0 : index
    %c0_77 = arith.constant 0 : index
    %198 = vector.load %arg12[%c0_76, %c0_77] : memref<1x32xf32, #tpu.memory_space<vmem>>, vector<1x32xf32>
    %199 = vector.broadcast %198 : vector<1x32xf32> to vector<8x32xf32>
    %200 = arith.addf %197, %199 : vector<8x32xf32>
    %201 = arith.addf %111, %200 : vector<8x32xf32>
    %cst_78 = arith.constant dense<0.000000e+00> : vector<8xf32>
    %202 = vector.multi_reduction <add>, %201, %cst_78 [1] : vector<8x32xf32> to vector<8xf32>
    %203 = vector.shape_cast %202 : vector<8xf32> to vector<8x1xf32>
    %cst_79 = arith.constant 3.200000e+01 : f32
    %204 = vector.broadcast %cst_79 : f32 to vector<8x1xf32>
    %205 = arith.divf %203, %204 : vector<8x1xf32>
    %206 = vector.broadcast %205 : vector<8x1xf32> to vector<8x32xf32>
    %207 = arith.subf %201, %206 : vector<8x32xf32>
    %208 = arith.mulf %207, %207 : vector<8x32xf32>
    %cst_80 = arith.constant dense<0.000000e+00> : vector<8xf32>
    %209 = vector.multi_reduction <add>, %208, %cst_80 [1] : vector<8x32xf32> to vector<8xf32>
    %210 = vector.shape_cast %209 : vector<8xf32> to vector<8x1xf32>
    %cst_81 = arith.constant 3.200000e+01 : f32
    %211 = vector.broadcast %cst_81 : f32 to vector<8x1xf32>
    %212 = arith.divf %210, %211 : vector<8x1xf32>
    %cst_82 = arith.constant 9.99999974E-6 : f32
    %213 = vector.broadcast %cst_82 : f32 to vector<8x1xf32>
    %214 = arith.addf %212, %213 : vector<8x1xf32>
    %215 = math.rsqrt %214 : vector<8x1xf32>
    %216 = vector.broadcast %215 : vector<8x1xf32> to vector<8x32xf32>
    %217 = arith.mulf %207, %216 : vector<8x32xf32>
    %c0_83 = arith.constant 0 : index
    %c0_84 = arith.constant 0 : index
    %218 = vector.load %arg19[%c0_83, %c0_84] : memref<1x32xf32, #tpu.memory_space<vmem>>, vector<1x32xf32>
    %219 = vector.broadcast %218 : vector<1x32xf32> to vector<8x32xf32>
    %220 = arith.mulf %217, %219 : vector<8x32xf32>
    %c0_85 = arith.constant 0 : index
    %c0_86 = arith.constant 0 : index
    %221 = vector.load %arg20[%c0_85, %c0_86] : memref<1x32xf32, #tpu.memory_space<vmem>>, vector<1x32xf32>
    %222 = vector.broadcast %221 : vector<1x32xf32> to vector<8x32xf32>
    %223 = arith.addf %220, %222 : vector<8x32xf32>
    %c0_87 = arith.constant 0 : index
    %c0_88 = arith.constant 0 : index
    %224 = vector.load %arg13[%c0_87, %c0_88] : memref<32x64xf32, #tpu.memory_space<vmem>>, vector<32x64xf32>
    %cst_89 = arith.constant dense<0.000000e+00> : vector<8x64xf32>
    %225 = tpu.matmul %223, %224, %cst_89 {dimension_numbers = #tpu.dot_dimension_numbers<[1], [0], [0], [1], [0, 0, 1, 1], [], []>} : vector<8x32xf32>, vector<32x64xf32>, vector<8x64xf32> -> vector<8x64xf32>
    %c0_90 = arith.constant 0 : index
    %c0_91 = arith.constant 0 : index
    %226 = vector.load %arg14[%c0_90, %c0_91] : memref<1x64xf32, #tpu.memory_space<vmem>>, vector<1x64xf32>
    %227 = vector.broadcast %226 : vector<1x64xf32> to vector<8x64xf32>
    %228 = arith.addf %225, %227 : vector<8x64xf32>
    %cst_92 = arith.constant 0.000000e+00 : f32
    %229 = vector.broadcast %cst_92 : f32 to vector<8x64xf32>
    %230 = arith.maximumf %228, %229 : vector<8x64xf32>
    %c0_93 = arith.constant 0 : index
    %c0_94 = arith.constant 0 : index
    %231 = vector.load %arg15[%c0_93, %c0_94] : memref<64x32xf32, #tpu.memory_space<vmem>>, vector<64x32xf32>
    %cst_95 = arith.constant dense<0.000000e+00> : vector<8x32xf32>
    %232 = tpu.matmul %230, %231, %cst_95 {dimension_numbers = #tpu.dot_dimension_numbers<[1], [0], [0], [1], [0, 0, 1, 1], [], []>} : vector<8x64xf32>, vector<64x32xf32>, vector<8x32xf32> -> vector<8x32xf32>
    %c0_96 = arith.constant 0 : index
    %c0_97 = arith.constant 0 : index
    %233 = vector.load %arg16[%c0_96, %c0_97] : memref<1x32xf32, #tpu.memory_space<vmem>>, vector<1x32xf32>
    %234 = vector.broadcast %233 : vector<1x32xf32> to vector<8x32xf32>
    %235 = arith.addf %232, %234 : vector<8x32xf32>
    %236 = arith.addf %223, %235 : vector<8x32xf32>
    %cst_98 = arith.constant dense<0.000000e+00> : vector<8xf32>
    %237 = vector.multi_reduction <add>, %236, %cst_98 [1] : vector<8x32xf32> to vector<8xf32>
    %238 = vector.shape_cast %237 : vector<8xf32> to vector<8x1xf32>
    %cst_99 = arith.constant 3.200000e+01 : f32
    %239 = vector.broadcast %cst_99 : f32 to vector<8x1xf32>
    %240 = arith.divf %238, %239 : vector<8x1xf32>
    %241 = vector.broadcast %240 : vector<8x1xf32> to vector<8x32xf32>
    %242 = arith.subf %236, %241 : vector<8x32xf32>
    %243 = arith.mulf %242, %242 : vector<8x32xf32>
    %cst_100 = arith.constant dense<0.000000e+00> : vector<8xf32>
    %244 = vector.multi_reduction <add>, %243, %cst_100 [1] : vector<8x32xf32> to vector<8xf32>
    %245 = vector.shape_cast %244 : vector<8xf32> to vector<8x1xf32>
    %cst_101 = arith.constant 3.200000e+01 : f32
    %246 = vector.broadcast %cst_101 : f32 to vector<8x1xf32>
    %247 = arith.divf %245, %246 : vector<8x1xf32>
    %cst_102 = arith.constant 9.99999974E-6 : f32
    %248 = vector.broadcast %cst_102 : f32 to vector<8x1xf32>
    %249 = arith.addf %247, %248 : vector<8x1xf32>
    %250 = math.rsqrt %249 : vector<8x1xf32>
    %251 = vector.broadcast %250 : vector<8x1xf32> to vector<8x32xf32>
    %252 = arith.mulf %242, %251 : vector<8x32xf32>
    %c0_103 = arith.constant 0 : index
    %c0_104 = arith.constant 0 : index
    %253 = vector.load %arg21[%c0_103, %c0_104] : memref<1x32xf32, #tpu.memory_space<vmem>>, vector<1x32xf32>
    %254 = vector.broadcast %253 : vector<1x32xf32> to vector<8x32xf32>
    %255 = arith.mulf %252, %254 : vector<8x32xf32>
    %c0_105 = arith.constant 0 : index
    %c0_106 = arith.constant 0 : index
    %256 = vector.load %arg22[%c0_105, %c0_106] : memref<1x32xf32, #tpu.memory_space<vmem>>, vector<1x32xf32>
    %257 = vector.broadcast %256 : vector<1x32xf32> to vector<8x32xf32>
    %258 = arith.addf %255, %257 : vector<8x32xf32>
    %c0_107 = arith.constant 0 : index
    %c0_108 = arith.constant 0 : index
    %c0_109 = arith.constant 0 : index
    %259 = vector.load %arg23[%c0_107, %c0_108, %c0_109] : memref<1x8x32xf32, #tpu.memory_space<vmem>>, vector<1x8x32xf32>
    %260 = vector.shape_cast %259 : vector<1x8x32xf32> to vector<8x32xf32>
    %261 = vector.shape_cast %258 : vector<8x32xf32> to vector<1x8x32xf32>
    tpu.vector_store %arg23[%c0_107, %c0_108, %c0_109], %261 {strides = array<i32>} : memref<1x8x32xf32, #tpu.memory_space<vmem>>, vector<1x8x32xf32>,
    return
  }
  func.func @transform_0(%arg0: i32) -> (i32, i32, i32) {
    %c0_i32 = arith.constant 0 : i32
    %c0_i32_0 = arith.constant 0 : i32
    %c0_i32_1 = arith.constant 0 : i32
    return %arg0, %c0_i32, %c0_i32_0 : i32, i32, i32
  }
  func.func @transform_1(%arg0: i32) -> (i32, i32, i32) {
    %c0_i32 = arith.constant 0 : i32
    %c0_i32_0 = arith.constant 0 : i32
    %c0_i32_1 = arith.constant 0 : i32
    return %arg0, %c0_i32, %c0_i32_0 : i32, i32, i32
  }
  func.func @transform_2(%arg0: i32) -> (i32, i32) {
    %c0_i32 = arith.constant 0 : i32
    %c0_i32_0 = arith.constant 0 : i32
    %c0_i32_1 = arith.constant 0 : i32
    return %c0_i32, %c0_i32_0 : i32, i32
  }
  func.func @transform_3(%arg0: i32) -> (i32, i32) {
    %c0_i32 = arith.constant 0 : i32
    %c0_i32_0 = arith.constant 0 : i32
    %c0_i32_1 = arith.constant 0 : i32
    return %c0_i32, %c0_i32_0 : i32, i32
  }
  func.func @transform_4(%arg0: i32) -> (i32, i32) {
    %c0_i32 = arith.constant 0 : i32
    %c0_i32_0 = arith.constant 0 : i32
    %c0_i32_1 = arith.constant 0 : i32
    return %c0_i32, %c0_i32_0 : i32, i32
  }
  func.func @transform_5(%arg0: i32) -> (i32, i32) {
    %c0_i32 = arith.constant 0 : i32
    %c0_i32_0 = arith.constant 0 : i32
    %c0_i32_1 = arith.constant 0 : i32
    return %c0_i32, %c0_i32_0 : i32, i32
  }
  func.func @transform_6(%arg0: i32) -> (i32, i32) {
    %c0_i32 = arith.constant 0 : i32
    %c0_i32_0 = arith.constant 0 : i32
    %c0_i32_1 = arith.constant 0 : i32
    return %c0_i32, %c0_i32_0 : i32, i32
  }
  func.func @transform_7(%arg0: i32) -> (i32, i32) {
    %c0_i32 = arith.constant 0 : i32
    %c0_i32_0 = arith.constant 0 : i32
    %c0_i32_1 = arith.constant 0 : i32
    return %c0_i32, %c0_i32_0 : i32, i32
  }
  func.func @transform_8(%arg0: i32) -> (i32, i32) {
    %c0_i32 = arith.constant 0 : i32
    %c0_i32_0 = arith.constant 0 : i32
    %c0_i32_1 = arith.constant 0 : i32
    return %c0_i32, %c0_i32_0 : i32, i32
  }
  func.func @transform_9(%arg0: i32) -> (i32, i32) {
    %c0_i32 = arith.constant 0 : i32
    %c0_i32_0 = arith.constant 0 : i32
    %c0_i32_1 = arith.constant 0 : i32
    return %c0_i32, %c0_i32_0 : i32, i32
  }
  func.func @transform_10(%arg0: i32) -> (i32, i32) {
    %c0_i32 = arith.constant 0 : i32
    %c0_i32_0 = arith.constant 0 : i32
    %c0_i32_1 = arith.constant 0 : i32
    return %c0_i32, %c0_i32_0 : i32, i32
  }
  func.func @transform_11(%arg0: i32) -> (i32, i32) {
    %c0_i32 = arith.constant 0 : i32
    %c0_i32_0 = arith.constant 0 : i32
    %c0_i32_1 = arith.constant 0 : i32
    return %c0_i32, %c0_i32_0 : i32, i32
  }
  func.func @transform_12(%arg0: i32) -> (i32, i32) {
    %c0_i32 = arith.constant 0 : i32
    %c0_i32_0 = arith.constant 0 : i32
    %c0_i32_1 = arith.constant 0 : i32
    return %c0_i32, %c0_i32_0 : i32, i32
  }
  func.func @transform_13(%arg0: i32) -> (i32, i32) {
    %c0_i32 = arith.constant 0 : i32
    %c0_i32_0 = arith.constant 0 : i32
    %c0_i32_1 = arith.constant 0 : i32
    return %c0_i32, %c0_i32_0 : i32, i32
  }
  func.func @transform_14(%arg0: i32) -> (i32, i32) {
    %c0_i32 = arith.constant 0 : i32
    %c0_i32_0 = arith.constant 0 : i32
    %c0_i32_1 = arith.constant 0 : i32
    return %c0_i32, %c0_i32_0 : i32, i32
  }
  func.func @transform_15(%arg0: i32) -> (i32, i32) {
    %c0_i32 = arith.constant 0 : i32
    %c0_i32_0 = arith.constant 0 : i32
    %c0_i32_1 = arith.constant 0 : i32
    return %c0_i32, %c0_i32_0 : i32, i32
  }
  func.func @transform_16(%arg0: i32) -> (i32, i32) {
    %c0_i32 = arith.constant 0 : i32
    %c0_i32_0 = arith.constant 0 : i32
    %c0_i32_1 = arith.constant 0 : i32
    return %c0_i32, %c0_i32_0 : i32, i32
  }
  func.func @transform_17(%arg0: i32) -> (i32, i32) {
    %c0_i32 = arith.constant 0 : i32
    %c0_i32_0 = arith.constant 0 : i32
    %c0_i32_1 = arith.constant 0 : i32
    return %c0_i32, %c0_i32_0 : i32, i32
  }
  func.func @transform_18(%arg0: i32) -> (i32, i32) {
    %c0_i32 = arith.constant 0 : i32
    %c0_i32_0 = arith.constant 0 : i32
    %c0_i32_1 = arith.constant 0 : i32
    return %c0_i32, %c0_i32_0 : i32, i32
  }
  func.func @transform_19(%arg0: i32) -> (i32, i32) {
    %c0_i32 = arith.constant 0 : i32
    %c0_i32_0 = arith.constant 0 : i32
    %c0_i32_1 = arith.constant 0 : i32
    return %c0_i32, %c0_i32_0 : i32, i32
  }
  func.func @transform_20(%arg0: i32) -> (i32, i32) {
    %c0_i32 = arith.constant 0 : i32
    %c0_i32_0 = arith.constant 0 : i32
    %c0_i32_1 = arith.constant 0 : i32
    return %c0_i32, %c0_i32_0 : i32, i32
  }
  func.func @transform_21(%arg0: i32) -> (i32, i32) {
    %c0_i32 = arith.constant 0 : i32
    %c0_i32_0 = arith.constant 0 : i32
    %c0_i32_1 = arith.constant 0 : i32
    return %c0_i32, %c0_i32_0 : i32, i32
  }
  func.func @transform_22(%arg0: i32) -> (i32, i32, i32) {
    %c0_i32 = arith.constant 0 : i32
    %c0_i32_0 = arith.constant 0 : i32
    %c0_i32_1 = arith.constant 0 : i32
    return %arg0, %c0_i32, %c0_i32_0 : i32, i32, i32
  }
}

</mosaic_0001>

<bundles_post_ra>
// kernel: decoder_layer_forward.1
= control target key start
LH: loop header
LB: loop body
LE: loop exit
PB: predicated region body
PF: predicated region fallthrough
CT: control target
= control target key end

     0   :  { %s5423_s0 = inlined_call_operand.vmem [shape: f32[2,8,32], index: 0, kind: input, shape index: {}]   ;;  %s5424_s1 = inlined_call_operand.vmem [shape: f32[2,8,32], index: 1, kind: input, shape index: {}]   ;;  %s5425_s2 = inlined_call_operand.vmem [shape: f32[32,96], index: 2, kind: input, shape index: {}]   ;;  %s5426_s3 = inlined_call_operand.hbm [shape: f32[1,96], index: 3, kind: input, shape index: {}]   ;;  %s5427_s4 = inlined_call_operand.vmem [shape: f32[32,32], index: 4, kind: input, shape index: {}]   ;;  %s5428_s5 = inlined_call_operand.hbm [shape: f32[1,32], index: 5, kind: input, shape index: {}]   ;;  %s5429_s6 = inlined_call_operand.vmem [shape: f32[32,32], index: 6, kind: input, shape index: {}]   ;;  %s5430_s7 = inlined_call_operand.hbm [shape: f32[1,32], index: 7, kind: input, shape index: {}]   ;;  %s5431_s8 = inlined_call_operand.hbm [shape: f32[32,64], index: 8, kind: input, shape index: {}]   ;;  %s5432_s9 = inlined_call_operand.hbm [shape: f32[1,64], index: 9, kind: input, shape index: {}]   ;;  %s5433_s10 = inlined_call_operand.hbm [shape: f32[32,32], index: 10, kind: input, shape index: {}]   ;;  %s5434_s11 = inlined_call_operand.hbm [shape: f32[1,32], index: 11, kind: input, shape index: {}]   ;;  %s5435_s12 = inlined_call_operand.hbm [shape: f32[32,64], index: 12, kind: input, shape index: {}]   ;;  %s5436_s13 = inlined_call_operand.hbm [shape: f32[1,64], index: 13, kind: input, shape index: {}]   ;;  %s5437_s14 = inlined_call_operand.vmem [shape: f32[64,32], index: 14, kind: input, shape index: {}]   ;;  %s5438_s15 = inlined_call_operand.hbm [shape: f32[1,32], index: 15, kind: input, shape index: {}]   ;;  %s5439_s16 = inlined_call_operand.hbm [shape: f32[1,32], index: 16, kind: input, shape index: {}]   ;;  %s5440_s17 = inlined_call_operand.hbm [shape: f32[1,32], index: 17, kind: input, shape index: {}]   ;;  %s5441_s18 = inlined_call_operand.hbm [shape: f32[1,32], index: 18, kind: input, shape index: {}]   ;;  %s5442_s19 = inlined_call_operand.hbm [shape: f32[1,32], index: 19, kind: input, shape index: {}]   ;;  %s5443_s20 = inlined_call_operand.hbm [shape: f32[1,32], index: 20, kind: input, shape index: {}]   ;;  %s5444_s21 = inlined_call_operand.hbm [shape: f32[1,32], index: 21, kind: input, shape index: {}]   ;;  %s5445_s22 = inlined_call_operand.hbm [shape: f32[2,8,32], index: 22, kind: output, shape index: {}]  }
   0x1   :  { %5469 = sst [smem:[#allocation45_spill]] %s5423_s0 }
   0x2   :  { %5470 = sst [smem:[#allocation46_spill]] %s5424_s1 }
   0x3   :  { %5471 = sst [smem:[#allocation47_spill]] %s5425_s2 }
   0x4   :  { %5472 = sst [smem:[#allocation48_spill]] %s5426_s3 }
   0x5   :  { %5473 = sst [smem:[#allocation49_spill]] %s5427_s4 }
   0x6   :  { %5474 = sst [smem:[#allocation50_spill]] %s5428_s5 }
   0x7   :  { %5475 = sst [smem:[#allocation51_spill]] %s5429_s6 }
   0x8   :  { %5476 = sst [smem:[#allocation52_spill]] %s5430_s7 }
   0x9   :  { %5477 = sst [smem:[#allocation53_spill]] %s5431_s8 }
   0xa   :  { %5478 = sst [smem:[#allocation54_spill]] %s5445_s22 }
   0xb   :  { %27 = vsyncpa [#allocation3], 0 }
   0xc   :  { %28 = vsyncpa [#allocation6], 0 }
   0xd   :  { %29 = vsyncpa [#allocation9], 0 }
   0xe   :  { %30 = vsyncpa [#allocation12], 0 }
   0xf   :  { %31 = vsyncpa [#allocation15], 0 }
  0x10   :  { %32 = vsyncpa [#allocation18], 0 }
  0x11   :  { %33 = vsyncpa [#allocation21], 0 }
  0x12   :  { %34 = vsyncpa [#allocation24], 0 }
  0x13   :  { %35 = vsyncpa [#allocation27], 0 }
  0x14   :  { %36 = vsyncpa [#allocation4], 0 }
  0x15   :  { %38 = vsyncpa [#allocation4 + $0x1], 0  ;;  %s4861_s3 = smov 0   ;;  %s4863_s28 = smov 0  }
  0x16   :  { %s4865_s29 = smov 0   ;;  %s4867_s30 = smov 0  }
  0x17 LB: > { %5479 = sst [smem:[#allocation39_spill]] %s4700_s3  ;;  %s4882_s4 = sadd.s32 4294967295, %s4712_s30   ;;  %s4712_s30 = sphi %s4867_s30, %s5531_s30   ;;  %s4708_s29 = sphi %s4865_s29, %s5533_s29   ;;  %s4704_s28 = sphi %s4863_s28, %s5535_s28   ;;  %s4700_s3 = sphi %s4861_s3, %s5534_s3  }
  0x18   : > { %5480 = sst [smem:[#allocation40_spill]] %s4708_s29  ;;  %s3594_s0 = sadd.s32 4294967294, %s4712_s30  }
  0x19   : > { %5481 = sst [smem:[#allocation41_spill]] %s4712_s30  ;;  %s4886_s23 = sadd.s32 1, %s4712_s30  }
  0x1a   : > { %5482 = sst [smem:[#allocation42_spill]] %s4886_s23  ;;  %s523_s1 = sadd.s32 1, %s4708_s29 }
  0x1b   : > { %s520_s5 = ssub.s32 %s4712_s30, %s4886_s23  ;;  %p533_p0 = scmp.ne.s32.totalorder %s4708_s29, %s4704_s28 }
  0x1c   : > { %p521_p1 = scmp.eq.s32.totalorder %s520_s5, 0  ;;  %p534_p2 = scmp.eq.s32.totalorder %s4882_s4, 1 }
  0x1d   : > { %p539_p3 = scmp.ne.s32.totalorder %s4704_s28, %s4700_s3  ;;  %p540_p4 = scmp.eq.s32.totalorder %s3594_s0, 1 }
  0x1e   : > { %s4897_s24 = scalar_select %p521_p1, %s4708_s29, %s523_s1  }
  0x1f   : > { %p4899_p5 = por %p534_p2, %p533_p0  ;;  %p4903_p6 = por %p540_p4, %p539_p3 }
  0x20   : > { %5483 = sst [smem:[#allocation43_spill]] %s4897_s24  ;;  %p3595_p7 = scmp.ge.s32.totalorder %s4712_s30, 1 }
  0x21   : > { %s5484_s6 = scalar_select %p4899_p5, 1, 0 }
  0x22   : > { %s5485_s25 = scalar_select %p4903_p6, 1, 0 }
  0x23   : > { %p547_p8 = scmp.lt.s32.totalorder %s4712_s30, 3  ;;  %p5455_p9 = scmp.eq.s32.totalorder %s4882_s4, 0 }
  0x24   : > { %5486 = sst [smem:[#allocation44_spill]] %s5485_s25  ;;  %s4714_s2 = smov [#allocation5]  }
  0x25   : > { %p4910_p10 = pnand %p3595_p7, %p547_p8  ;;  %s577_s27 = sshll.u32 %s4714_s2, 4  ;;  %s578_s27 = int_to_ptr.vmem [resolvable:$true] %s577_s27 }
  0x26   : > { %s4715_s0 = smov [#allocation8]   ;;  %s4716_s24 = smov [#allocation11]  }
  0x27   : > { %p4013_p11 = pneg %p4910_p10  ;;  %s601_s1 = sshll.u32 %s4715_s0, 4  ;;  %s4922_s1 = int_to_ptr.vmem [resolvable:$true] %s601_s1 }
  0x28   : > { %s625_s29 = sshll.u32 %s4716_s24, 4  ;;  %s4211_s2 = scalar_lea.vmem %s578_s27, 16  ;;  %s626_s29 = int_to_ptr.vmem [resolvable:$true] %s625_s29 }
  0x29   : > { %p4918_p12 = pnand %p5455_p9, %p4013_p11  ;;  %p4212_p0 = scmp.ne.s32.totalorder %s578_s27, %s4211_s2 }
  0x2a   : > { %s4218_s0 = scalar_lea.vmem %s578_s27, 32  ;;  %p4219_p3 = scmp.lt.s32.totalorder %s578_s27, %s578_s27 }
  0x2b   : > { %p4926_p13 = pneg %p4918_p12  ;;  %p4220_p4 = scmp.lt.s32.totalorder %s4218_s0, %s4211_s2 }
  0x2d   : > { %p4214_p1 = pnand %p4212_p0, %p4926_p13  ;;  %p4221_p7 = por %p4220_p4, %p4219_p3 }
  0x2f   : > { %p4215_p2 = pneg %p4214_p1 }
  0x31   : > { %p4222_p8 = pnand %p4221_p7, %p4215_p2 }
  0x33   : > { %4225 = shalt.err (!%p4222_p8)
}
  0x34   : > { %s5490_s3 = sld [smem:[#allocation50_spill]]  ;;  %s4237_s30 = scalar_lea.vmem %s4922_s1, 512 }
  0x35   : > { %p4238_p11 = scmp.ne.s32.totalorder %s4922_s1, %s4237_s30  ;;  %p4245_p9 = scmp.lt.s32.totalorder %s4922_s1, %s4922_s1 }
  0x36   : > { %p4246_p3 = scmp.lt.s32.totalorder %s4237_s30, %s4237_s30 }
  0x37   : > { %p4240_p0 = pnand %p4238_p11, %p4926_p13 }
  0x38   : > { %p4247_p2 = por %p4246_p3, %p4245_p9 }
  0x39   : > { %p4241_p1 = pneg %p4240_p0 }
  0x3a   : > { %4019 = dma.hbm_to_vmem [thread:$0]  (!%p4918_p12), %s5490_s3, 16, %s578_s27, [#allocation6]  }
  0x3b   : > { %p4248_p4 = pnand %p4247_p2, %p4241_p1 }
  0x3d   : > { %4251 = shalt.err (!%p4248_p4)
}
  0x3e   : > { %s4717_s2 = smov 128   ;;  %s4718_s25 = smov 8  }
  0x3f   : > { %s5491_s8 = sld [smem:[#allocation53_spill]]  ;;  %s4263_s0 = scalar_lea.vmem %s626_s29, 512 }
  0x40   : > { %p4264_p7 = scmp.ne.s32.totalorder %s626_s29, %s4263_s0  ;;  %p4271_p11 = scmp.lt.s32.totalorder %s626_s29, %s626_s29 }
  0x41   : > { %p4272_p0 = scmp.lt.s32.totalorder %s4263_s0, %s4263_s0 }
  0x42   : > { %p4266_p9 = pnand %p4264_p7, %p4926_p13 }
  0x43   : > { %p4273_p1 = por %p4272_p0, %p4271_p11 }
  0x44   : > { %p4267_p8 = pneg %p4266_p9 }
  0x45   : > { %4025 = dma.hbm_to_vmem [thread:$0]  (!%p4918_p12), %s5491_s8, 512, %s4922_s1, [#allocation9], %s4717_s2, %s4717_s2, %s4718_s25  }
  0x46   : > { %p4274_p3 = pnand %p4273_p1, %p4267_p8 }
  0x48   : > { %4277 = shalt.err (!%p4274_p3)
}
  0x49   : > { %4031 = dma.hbm_to_vmem [thread:$0]  (!%p4918_p12), %s5433_s10, 512, %s626_s29, [#allocation12], %s4717_s2, %s4717_s2, %s4718_s25  }
  0x4a   : > { %s4719_s1 = smov [#allocation14]   ;;  %s4720_s27 = smov [#allocation17]  }
  0x4b   : > { %s649_s3 = sshll.u32 %s4719_s1, 4  ;;  %s677_s8 = sshll.u32 %s4720_s27, 4  ;;  %s650_s3 = int_to_ptr.vmem [resolvable:$true] %s649_s3  ;;  %s678_s8 = int_to_ptr.vmem [resolvable:$true] %s677_s8 }
  0x4c   : > { %s4289_s22 = scalar_lea.vmem %s650_s3, 512  ;;  %p4297_p9 = scmp.lt.s32.totalorder %s650_s3, %s650_s3 }
  0x4d   : > { %p4290_p2 = scmp.ne.s32.totalorder %s650_s3, %s4289_s22  ;;  %p4298_p8 = scmp.lt.s32.totalorder %s4289_s22, %s4289_s22 }
  0x4f   : > { %p4292_p4 = pnand %p4290_p2, %p4926_p13  ;;  %p4299_p11 = por %p4298_p8, %p4297_p9 }
  0x51   : > { %p4293_p7 = pneg %p4292_p4 }
  0x53   : > { %p4300_p0 = pnand %p4299_p11, %p4293_p7 }
  0x55   : > { %4303 = shalt.err (!%p4300_p0)
}
  0x56   : > { %4037 = dma.hbm_to_vmem [thread:$0]  (!%p4918_p12), %s5435_s12, 512, %s650_s3, [#allocation15], %s4717_s2, %s4717_s2, %s4718_s25  }
  0x57   : > { %s4315_s30 = scalar_lea.vmem %s678_s8, 16  ;;  %s4322_s22 = scalar_lea.vmem %s678_s8, 32 }
  0x58   : > { %p4316_p1 = scmp.ne.s32.totalorder %s678_s8, %s4315_s30  ;;  %p4323_p4 = scmp.lt.s32.totalorder %s678_s8, %s678_s8 }
  0x59   : > { %p4324_p7 = scmp.lt.s32.totalorder %s4322_s22, %s4315_s30 }
  0x5a   : > { %p4318_p3 = pnand %p4316_p1, %p4926_p13 }
  0x5b   : > { %p4325_p9 = por %p4324_p7, %p4323_p4 }
  0x5c   : > { %p4319_p2 = pneg %p4318_p3 }
  0x5e   : > { %p4326_p8 = pnand %p4325_p9, %p4319_p2 }
  0x60   : > { %4329 = shalt.err (!%p4326_p8)
}
  0x61   : > { %4043 = dma.hbm_to_vmem [thread:$0]  (!%p4918_p12), %s5438_s15, 16, %s678_s8, [#allocation18]  }
  0x62   : > { %s4721_s2 = smov [#allocation20]   ;;  %s4722_s3 = smov [#allocation23]  }
  0x63   : > { %s699_s25 = sshll.u32 %s4721_s2, 4  ;;  %s721_s27 = sshll.u32 %s4722_s3, 4  ;;  %s700_s25 = int_to_ptr.vmem [resolvable:$true] %s699_s25  ;;  %s722_s27 = int_to_ptr.vmem [resolvable:$true] %s721_s27 }
  0x64   : > { %s4341_s29 = scalar_lea.vmem %s700_s25, 16  ;;  %s4348_s0 = scalar_lea.vmem %s700_s25, 32 }
  0x65   : > { %p4342_p11 = scmp.ne.s32.totalorder %s700_s25, %s4341_s29  ;;  %p4349_p3 = scmp.lt.s32.totalorder %s700_s25, %s700_s25 }
  0x66   : > { %p4350_p2 = scmp.lt.s32.totalorder %s4348_s0, %s4341_s29 }
  0x67   : > { %p4344_p0 = pnand %p4342_p11, %p4926_p13 }
  0x68   : > { %p4351_p4 = por %p4350_p2, %p4349_p3 }
  0x69   : > { %p4345_p1 = pneg %p4344_p0 }
  0x6b   : > { %p4352_p7 = pnand %p4351_p4, %p4345_p1 }
  0x6d   : > { %4355 = shalt.err (!%p4352_p7)
}
  0x6e   : > { %4049 = dma.hbm_to_vmem [thread:$0]  (!%p4918_p12), %s5440_s17, 16, %s700_s25, [#allocation21]  }
  0x6f   : > { %s4367_s22 = scalar_lea.vmem %s722_s27, 16  ;;  %s4374_s24 = scalar_lea.vmem %s722_s27, 32 }
  0x70   : > { %p4368_p9 = scmp.ne.s32.totalorder %s722_s27, %s4367_s22  ;;  %p4375_p0 = scmp.lt.s32.totalorder %s722_s27, %s722_s27 }
  0x71   : > { %p4376_p6 = scmp.lt.s32.totalorder %s4374_s24, %s4367_s22 }
  0x72   : > { %p4370_p8 = pnand %p4368_p9, %p4926_p13 }
  0x73   : > { %p4377_p5 = por %p4376_p6, %p4375_p0 }
  0x74   : > { %p4371_p11 = pneg %p4370_p8 }
  0x76   : > { %p4378_p3 = pnand %p4377_p5, %p4371_p11 }
  0x78   : > { %4381 = shalt.err (!%p4378_p3)
}
  0x79   : > { %4055 = dma.hbm_to_vmem [thread:$0]  (!%p4918_p12), %s5442_s19, 16, %s722_s27, [#allocation24]  }
  0x7a   : > { %s4723_s25 = smov [#allocation2]   ;;  %s4724_s29 = smov [#allocation7]  }
  0x7b   : > { %s563_s3 = sshll.u32 %s4723_s25, 4  ;;  %s591_s0 = sshll.u32 %s4724_s29, 4  ;;  %s564_s3 = int_to_ptr.vmem [resolvable:$true] %s563_s3  ;;  %s592_s0 = int_to_ptr.vmem [resolvable:$true] %s591_s0 }
  0x7c   : > { %s4393_s30 = scalar_lea.vmem %s564_s3, 16  ;;  %s4400_s8 = scalar_lea.vmem %s564_s3, 32 }
  0x7d   : > { %p4394_p1 = scmp.ne.s32.totalorder %s564_s3, %s4393_s30  ;;  %p4401_p5 = scmp.lt.s32.totalorder %s564_s3, %s564_s3 }
  0x7e   : > { %p4402_p6 = scmp.lt.s32.totalorder %s4400_s8, %s4393_s30 }
  0x7f   : > { %p4396_p2 = pnand %p4394_p1, %p4926_p13 }
  0x80   : > { %p4403_p7 = por %p4402_p6, %p4401_p5 }
  0x81   : > { %p4397_p4 = pneg %p4396_p2 }
  0x83   : > { %p4404_p9 = pnand %p4403_p7, %p4397_p4 }
  0x85   : > { %4407 = shalt.err (!%p4404_p9)
}
  0x86   : > { %s5492_s24 = sld [smem:[#allocation48_spill]]  ;;  %s4419_s1 = scalar_lea.vmem %s592_s0, 16 }
  0x87   : > { %p4420_p8 = scmp.ne.s32.totalorder %s592_s0, %s4419_s1  ;;  %s4426_s2 = scalar_lea.vmem %s592_s0, 32 }
  0x88   : > { %p4427_p3 = scmp.lt.s32.totalorder %s592_s0, %s592_s0  ;;  %p4428_p1 = scmp.lt.s32.totalorder %s4426_s2, %s4419_s1 }
  0x89   : > { %p4422_p11 = pnand %p4420_p8, %p4926_p13 }
  0x8a   : > { %p4429_p2 = por %p4428_p1, %p4427_p3 }
  0x8b   : > { %p4423_p0 = pneg %p4422_p11 }
  0x8c   : > { %4016 = dma.hbm_to_vmem [thread:$0]  (!%p4918_p12), %s5492_s24, 16, %s564_s3, [#allocation3]  }
  0x8d   : > { %p4430_p5 = pnand %p4429_p2, %p4423_p0 }
  0x8f   : > { %4433 = shalt.err (!%p4430_p5)
}
  0x90   : > { %s5493_s7 = sld [smem:[#allocation52_spill]]  ;;  %s4725_s3 = smov [#allocation10]  }
  0x91   : > { %s615_s30 = sshll.u32 %s4725_s3, 4  ;;  %s4726_s8 = smov [#allocation13]   ;;  %s616_s30 = int_to_ptr.vmem [resolvable:$true] %s615_s30 }
  0x92   : > { %s639_s22 = sshll.u32 %s4726_s8, 4  ;;  %s4445_s27 = scalar_lea.vmem %s616_s30, 16  ;;  %s640_s22 = int_to_ptr.vmem [resolvable:$true] %s639_s22 }
  0x93   : > { %p4446_p4 = scmp.ne.s32.totalorder %s616_s30, %s4445_s27  ;;  %s4452_s24 = scalar_lea.vmem %s616_s30, 32 }
  0x94   : > { %p4453_p9 = scmp.lt.s32.totalorder %s616_s30, %s616_s30  ;;  %p4454_p8 = scmp.lt.s32.totalorder %s4452_s24, %s4445_s27 }
  0x95   : > { %p4448_p6 = pnand %p4446_p4, %p4926_p13 }
  0x96   : > { %4022 = dma.hbm_to_vmem [thread:$0]  (!%p4918_p12), %s5493_s7, 16, %s592_s0, [#allocation6]  }
  0x97   : > { %p4449_p7 = pneg %p4448_p6  ;;  %p4455_p11 = por %p4454_p8, %p4453_p9 }
  0x99   : > { %p4456_p0 = pnand %p4455_p11, %p4449_p7 }
  0x9b   : > { %4459 = shalt.err (!%p4456_p0)
}
  0x9c   : > { %4028 = dma.hbm_to_vmem [thread:$0]  (!%p4918_p12), %s5432_s9, 16, %s616_s30, [#allocation9]  }
  0x9d   : > { %s4471_s2 = scalar_lea.vmem %s640_s22, 16  ;;  %s4478_s25 = scalar_lea.vmem %s640_s22, 32 }
  0x9e   : > { %p4472_p3 = scmp.ne.s32.totalorder %s640_s22, %s4471_s2  ;;  %p4479_p5 = scmp.lt.s32.totalorder %s640_s22, %s640_s22 }
  0x9f   : > { %p4480_p4 = scmp.lt.s32.totalorder %s4478_s25, %s4471_s2 }
  0xa0   : > { %p4474_p1 = pnand %p4472_p3, %p4926_p13 }
  0xa1   : > { %p4481_p6 = por %p4480_p4, %p4479_p5 }
  0xa2   : > { %p4475_p2 = pneg %p4474_p1 }
  0xa4   : > { %p4482_p9 = pnand %p4481_p6, %p4475_p2 }
  0xa6   : > { %4485 = shalt.err (!%p4482_p9)
}
  0xa7   : > { %4034 = dma.hbm_to_vmem [thread:$0]  (!%p4918_p12), %s5434_s11, 16, %s640_s22, [#allocation12]  }
  0xa8   : > { %s4727_s30 = smov [#allocation16]   ;;  %s4728_s27 = smov [#allocation19]  }
  0xa9   : > { %s663_s8 = sshll.u32 %s4727_s30, 4  ;;  %s688_s24 = sshll.u32 %s4728_s27, 4  ;;  %s664_s8 = int_to_ptr.vmem [resolvable:$true] %s663_s8  ;;  %s689_s24 = int_to_ptr.vmem [resolvable:$true] %s688_s24 }
  0xaa   : > { %s4497_s1 = scalar_lea.vmem %s664_s8, 16  ;;  %s4504_s0 = scalar_lea.vmem %s664_s8, 32 }
  0xab   : > { %p4498_p7 = scmp.ne.s32.totalorder %s664_s8, %s4497_s1  ;;  %p4505_p0 = scmp.lt.s32.totalorder %s664_s8, %s664_s8 }
  0xac   : > { %p4506_p3 = scmp.lt.s32.totalorder %s4504_s0, %s4497_s1 }
  0xad   : > { %p4500_p8 = pnand %p4498_p7, %p4926_p13 }
  0xae   : > { %p4507_p1 = por %p4506_p3, %p4505_p0 }
  0xaf   : > { %p4501_p11 = pneg %p4500_p8 }
  0xb1   : > { %p4508_p2 = pnand %p4507_p1, %p4501_p11 }
  0xb3   : > { %4511 = shalt.err (!%p4508_p2)
}
  0xb4   : > { %4040 = dma.hbm_to_vmem [thread:$0]  (!%p4918_p12), %s5436_s13, 16, %s664_s8, [#allocation15]  }
  0xb5   : > { %s4523_s25 = scalar_lea.vmem %s689_s24, 16  ;;  %s4530_s29 = scalar_lea.vmem %s689_s24, 32 }
  0xb6   : > { %p4524_p5 = scmp.ne.s32.totalorder %s689_s24, %s4523_s25  ;;  %p4531_p9 = scmp.lt.s32.totalorder %s689_s24, %s689_s24 }
  0xb7   : > { %p4532_p7 = scmp.lt.s32.totalorder %s4530_s29, %s4523_s25 }
  0xb8   : > { %p4526_p4 = pnand %p4524_p5, %p4926_p13 }
  0xb9   : > { %p4533_p8 = por %p4532_p7, %p4531_p9 }
  0xba   : > { %p4527_p6 = pneg %p4526_p4 }
  0xbc   : > { %p4534_p0 = pnand %p4533_p8, %p4527_p6 }
  0xbe   : > { %4537 = shalt.err (!%p4534_p0)
}
  0xbf   : > { %4046 = dma.hbm_to_vmem [thread:$0]  (!%p4918_p12), %s5439_s16, 16, %s689_s24, [#allocation18]  }
  0xc0   : > { %s4729_s8 = smov [#allocation22]   ;;  %s4730_s1 = smov [#allocation25]  }
  0xc1   : > { %s710_s27 = sshll.u32 %s4729_s8, 4  ;;  %s732_s0 = sshll.u32 %s4730_s1, 4  ;;  %s711_s27 = int_to_ptr.vmem [resolvable:$true] %s710_s27  ;;  %s733_s0 = int_to_ptr.vmem [resolvable:$true] %s732_s0 }
  0xc2   : > { %s4549_s2 = scalar_lea.vmem %s711_s27, 16  ;;  %s4556_s22 = scalar_lea.vmem %s711_s27, 32 }
  0xc3   : > { %p4550_p11 = scmp.ne.s32.totalorder %s711_s27, %s4549_s2  ;;  %p4557_p2 = scmp.lt.s32.totalorder %s711_s27, %s711_s27 }
  0xc4   : > { %p4558_p5 = scmp.lt.s32.totalorder %s4556_s22, %s4549_s2 }
  0xc5   : > { %p4552_p3 = pnand %p4550_p11, %p4926_p13 }
  0xc6   : > { %p4559_p4 = por %p4558_p5, %p4557_p2 }
  0xc7   : > { %p4553_p1 = pneg %p4552_p3 }
  0xc9   : > { %p4560_p6 = pnand %p4559_p4, %p4553_p1 }
  0xcb   : > { %4563 = shalt.err (!%p4560_p6)
}
  0xcc   : > { %4052 = dma.hbm_to_vmem [thread:$0]  (!%p4918_p12), %s5441_s18, 16, %s711_s27, [#allocation21]  }
  0xcd   : > { %s4575_s29 = scalar_lea.vmem %s733_s0, 16  ;;  %s4582_s3 = scalar_lea.vmem %s733_s0, 32 }
  0xce   : > { %p4576_p9 = scmp.ne.s32.totalorder %s733_s0, %s4575_s29  ;;  %p4583_p0 = scmp.lt.s32.totalorder %s733_s0, %s733_s0 }
  0xcf   : > { %p4584_p11 = scmp.lt.s32.totalorder %s4582_s3, %s4575_s29 }
  0xd0   : > { %p4578_p7 = pnand %p4576_p9, %p4926_p13 }
  0xd1   : > { %p4585_p3 = por %p4584_p11, %p4583_p0 }
  0xd2   : > { %p4579_p8 = pneg %p4578_p7 }
  0xd4   : > { %p4586_p2 = pnand %p4585_p3, %p4579_p8 }
  0xd6   : > { %4589 = shalt.err (!%p4586_p2)
}
  0xd7   : > { %4058 = dma.hbm_to_vmem [thread:$0]  (!%p4918_p12), %s5443_s20, 16, %s733_s0, [#allocation24]  }
  0xd8   : > { %s4731_s27 = smov [#allocation26]  }
  0xd9   : > { %s743_s1 = sshll.u32 %s4731_s27, 4  ;;  %s744_s1 = int_to_ptr.vmem [resolvable:$true] %s743_s1 }
  0xda   : > { %s4601_s2 = scalar_lea.vmem %s744_s1, 16  ;;  %s4608_s22 = scalar_lea.vmem %s744_s1, 32 }
  0xdb   : > { %p4602_p1 = scmp.ne.s32.totalorder %s744_s1, %s4601_s2  ;;  %p4609_p6 = scmp.lt.s32.totalorder %s744_s1, %s744_s1 }
  0xdc   : > { %p4610_p9 = scmp.lt.s32.totalorder %s4608_s22, %s4601_s2 }
  0xdd   : > { %p4604_p5 = pnand %p4602_p1, %p4926_p13 }
  0xde   : > { %p4611_p7 = por %p4610_p9, %p4609_p6 }
  0xdf   : > { %p4605_p4 = pneg %p4604_p5 }
  0xe1   : > { %p4612_p8 = pnand %p4611_p7, %p4605_p4 }
  0xe3   : > { %4615 = shalt.err (!%p4612_p8)
}
  0xe4   : > { %4061 = dma.hbm_to_vmem [thread:$0]  (!%p4918_p12), %s5444_s21, 16, %s744_s1, [#allocation27]  }
  0xe5   : > { %770 = sbr.rel (%p4910_p10) target bundleno = 6447 (0x192f), region = 108  ;;  %p5494_p0 = scmp.eq.s32.totalorder (!%p4910_p10), %s4882_s4, 0 }
  0xea   : > { %4659 = dma.done.wait (%p5494_p0), [#allocation3], 16   ;;  %p5495_p13 = pmov %p5494_p0 }
  0xeb   : > { %p5496_p11 = pmov %p5494_p0 }
  0xec   : > { %4661 = vsyncadd (%p5495_p13), [#allocation3], 4294967280 }
  0xed   : > { %4663 = dma.done.wait (%p5496_p11), [#allocation6], 32   ;;  %p5497_p3 = pmov %p5494_p0 }
  0xee   : > { %p5498_p2 = pmov %p5494_p0 }
  0xef   : > { %4665 = vsyncadd (%p5497_p3), [#allocation6], 4294967264 }
  0xf0   : > { %4667 = dma.done.wait (%p5498_p2), [#allocation9], 528   ;;  %p5499_p12 = pmov %p5494_p0 }
  0xf1   : > { %p5500_p10 = pmov %p5494_p0 }
  0xf2   : > { %4669 = vsyncadd (%p5499_p12), [#allocation9], 4294966768 }
  0xf3   : > { %4671 = dma.done.wait (%p5500_p10), [#allocation12], 528   ;;  %p5501_p1 = pmov %p5494_p0 }
  0xf4   : > { %p5502_p5 = pmov %p5494_p0 }
  0xf5   : > { %4673 = vsyncadd (%p5501_p1), [#allocation12], 4294966768 }
  0xf6   : > { %4675 = dma.done.wait (%p5502_p5), [#allocation15], 528   ;;  %p5503_p4 = pmov %p5494_p0 }
  0xf7   : > { %p5504_p6 = pmov %p5494_p0 }
  0xf8   : > { %4677 = vsyncadd (%p5503_p4), [#allocation15], 4294966768 }
  0xf9   : > { %4679 = dma.done.wait (%p5504_p6), [#allocation18], 32   ;;  %p5505_p9 = pmov %p5494_p0 }
  0xfa   : > { %p5506_p7 = pmov %p5494_p0 }
  0xfb   : > { %4681 = vsyncadd (%p5505_p9), [#allocation18], 4294967264 }
  0xfc   : > { %4683 = dma.done.wait (%p5506_p7), [#allocation21], 32   ;;  %p5507_p8 = pmov %p5494_p0 }
  0xfe   : > { %4685 = vsyncadd (%p5507_p8), [#allocation21], 4294967264 }
  0xff   : > { %4687 = dma.done.wait (%p5494_p0), [#allocation24], 32   ;;  %p5508_p13 = pmov %p5494_p0 }
 0x100   : > { %p5509_p11 = pmov %p5494_p0 }
 0x101   : > { %4689 = vsyncadd (%p5508_p13), [#allocation24], 4294967264 }
 0x102   : > { %4691 = dma.done.wait (%p5509_p11), [#allocation27], 16   ;;  %p5510_p3 = pmov %p5494_p0 }
 0x103   : > { %p895_p2 = scmp.lt.s32.totalorder %s4882_s4, 1  ;;  %v4732_v0 = vmov 0.0   ;;  %vm4733_vm0 = vmmov 0   ;;  %s5511_s29 = sld [smem:[#allocation47_spill]]  ;;  %vm916_vm1 = vcmask 261120   ;;  %vm997_vm2 = vcmask 64512  }
 0x104   : > { %4693 = vsyncadd (%p5510_p3), [#allocation27], 4294967280  ;;  %3764 = vmatprep.subr.mxu0 %v4732_v0  ;;  %3772 = vmatprep.mubr.msk.f32.mxu0 %vm4733_vm0, %v4732_v0  ;;  %s5513_s25 = sld [smem:[#allocation45_spill]]  ;;  %v3633_v6 = vld [vmem:[#allocation2] ss:$0 sm:$0xff]  ;;  %s5462_s3 = smov 96  }
 0x105   : > { %s5099_s23 = scalar_select %p895_p2, %s4882_s4, 1  ;;  %3780 = vmatprep.subr.mxu1 %v4732_v0  ;;  %3782 = vmatprep.mubr.msk.f32.mxu1 %vm4733_vm0, %v4732_v0  ;;  %vm3249_vm3 = vcmask 523264  }
 0x106   : > { %s5465_s30 = smov 88   ;;  %s4737_s27 = smov 56  }
 0x107   : > { %s3631_s26 = sshll.u32 %s5099_s23, 3  ;;  %s4738_s1 = smov 64  }
 0x108   : > { %s5459_s2 = smov 80   ;;  %s5463_s22 = smov 112  }
 0x109   : > { %s5512_s8 = smov %s5511_s29  ;;  %v908_v1 = vld [vmem:[%s5511_s29 + $0x18] sm:$0xff]  ;;  %s5466_s29 = smov 120  }
 0x10a   : > { %v907_v2 = vld [vmem:[%s5512_s8 + $0x10] sm:$0xff]  ;;  %3765 = vmatpush3.msra.mxu0 %v908_v1  ;;  %v906_v3 = vld [vmem:[%s5512_s8 + $0x8] sm:$0xff]  ;;  %s898_s24 = scalar_lea.vmem %s5513_s25, %s3631_s26  ;;  %v905_v4 = vld [vmem:[%s5512_s8] sm:$0xff]  ;;  %s5514_s5 = sld [smem:[#allocation49_spill]] }
 0x10b   : > { %3766 = vmatprep.subr.mxu0 %v4732_v0  ;;  %v5124_v5 = vld [vmem:[%s898_s24] sm:$0xff]  ;;  %s5460_s25 = smov 104   ;;  %s4743_s24 = smov 48  }
 0x10c   : > { %3767 = vmatpush3.msra.mxu0 %v907_v2  ;;  %s5523_s0 = smov 80   ;;  %p5526_p10 = scmp.ne.s32.totalorder %s5484_s6, 0 }
 0x10d   : > { %3768 = vmatprep.subr.mxu0 %v4732_v0 }
 0x10e   : > { %3769 = vmatpush3.msra.mxu0 %v906_v3 }
 0x10f   : > { %3770 = vmatprep.subr.mxu0 %v4732_v0 }
 0x110   : > { %3771 = vmatpush3.msra.mxu0 %v905_v4  ;;  %v990_v37 = vld [vmem:[%s5514_s5] sm:$0xff]  ;;  %v991_v38 = vld [vmem:[%s5514_s5 + $0x8] sm:$0xff]  ;;  %v992_v1 = vld [vmem:[%s5514_s5 + $0x10] sm:$0xff] }
 0x111   : > { %3773 = vmatmul.mubr.msk.f32.vlgmr.msra.gmra.mxu0 %vm916_vm1, %v5124_v5  ;;  %3775 = vmatprep.subr.mxu0 %v4732_v0 }
 0x112   : > { %3777 = vmatprep.mubr.msk.f32.mxu0 %vm4733_vm0, %v4732_v0 }
 0x1d1   : > { %v986_v7 = vpop.f32.mrf.mxu0 }
 0x1d2   : > { %v5132_v8 = vadd.f32 %v3633_v6, %v986_v7 }
 0x1d3   : > { %v3774_v9 = vpop.f32.mrf.mxu0 }
 0x1d4   : > { %1159 = vrot.lane.b32.xlu1 %v5132_v8, %s5466_s29  ;;  %995 = vrot.lane.b32.xlu0 %v5132_v8, %s5462_s3  ;;  %s5516_s3 = sld [smem:[#allocation51_spill]]  ;;  %s5518_s29 = smov 120  }
 0x1d8   : > { %1161 = vrot.lane.b32.xlu0 %v5132_v8, %s5465_s30  ;;  %s5519_s30 = smov 88  }
 0x246   : > { %v996_v10 = vpop.permute.xlu0 %995  ;;  %v1160_v12 = vpop.permute.xlu1 %1159 }
 0x247   : > { %3776 = vmatpush3.xpose.msk.msra.mxu0 %vm997_vm2, %v996_v10 }
 0x248   : > { %3785 = vmatprep.subr.mxu0 %v4732_v0 }
 0x24a   : > { %3778 = vmatmul.mubr.msk.f32.vlgmr.msra.gmra.mxu0 %vm997_vm2, %v5132_v8  ;;  %v1162_v11 = vpop.permute.xlu0 %1161 }
 0x24b   : > { %3786 = vmatpush3.xpose.msk.msra.mxu0 %vm997_vm2, %v1162_v11  ;;  %3787 = vmatprep.mubr.msk.f32.mxu0 %vm4733_vm0, %v4732_v0 }
 0x24c   : > { %3795 = vmatprep.subr.mxu0 %v4732_v0 }
 0x24e   : > { %3788 = vmatmul.mubr.msk.f32.vlgmr.msra.gmra.mxu0 %vm997_vm2, %v1160_v12 }
 0x24f   : > { %3797 = vmatprep.mubr.msk.f32.mxu0 %vm4733_vm0, %v4732_v0  ;;  %3796 = vmatpush3.msra.mxu0 %v991_v38  ;;  %v2071_v38 = vld [vmem:[#allocation8] sm:$0xff] }
 0x250   : > { %3805 = vmatprep.subr.mxu0 %v4732_v0 }
 0x30a   : > { %v1068_v13 = vpop.f32.mrf.mxu0 }
 0x30b   : > { %v1072_v14 = vsel %vm997_vm2, %v1068_v13, -inf }
 0x30c   : > { %1073 = vmax.xlane.f32.xlu1 %v1072_v14  ;;  %v3779_v15 = vpop.f32.mrf.mxu0 }
 0x30d   : > { %v993_v15 = vld [vmem:[%s5514_s5 + $0x18] sm:$0xff]  ;;  %s4745_s5 = smov [#allocation28]  }
 0x30e   : > { %v1233_v16 = vpop.f32.mrf.mxu0  ;;  %s4620_s7 = sshll.u32 %s4745_s5, 4  ;;  %s4621_s7 = int_to_ptr.vmem [resolvable:$false] %s4620_s7 }
 0x30f   : > { %v1237_v17 = vsel %vm997_vm2, %v1233_v16, -inf }
 0x310   : > { %1238 = vmax.xlane.f32.xlu0 %v1237_v17  ;;  %v3789_v18 = vpop.f32.mrf.mxu0 }
 0x395   : > { %v1074_v19 = vpop.xlane.xlu1 %1073 }
 0x396   : > { %v1075_v20 = vsub.f32 %v1068_v13, %v1074_v19 }
 0x398   : > { %v1076_v21 = vmul.f32 1.442695, %v1075_v20 }
 0x399   : > { %v1239_v22 = vpop.xlane.xlu0 %1238 }
 0x39a   : > { %4162 = vpow2.f32 %v1076_v21  ;;  %v1240_v23 = vsub.f32 %v1233_v16, %v1239_v22 }
 0x39c   : > { %v1241_v24 = vmul.f32 1.442695, %v1240_v23 }
 0x39e   : > { %4164 = vpow2.f32 %v1241_v24  ;;  %v3651_v24 = vld [vmem:[#allocation5] ss:$0 sm:$0xff] }
 0x3a7   : > { %v4163_v25 = vpop.eup %4162 }
 0x3a8   : > { %v1078_v26 = vsel %vm997_vm2, %v4163_v25, 0.0 }
 0x3a9   : > { %1079 = vadd.xlane.f32.xlu0 %v1078_v26 }
 0x3ab   : > { %v4165_v27 = vpop.eup %4164 }
 0x3ac   : > { %v1243_v28 = vsel %vm997_vm2, %v4165_v27, 0.0 }
 0x3ad   : > { %1244 = vadd.xlane.f32.xlu1 %v1243_v28 }
 0x3be   : > { %1248 = vrot.lane.b32.xlu1 %v5132_v8, %s4737_s27  ;;  %s5515_s27 = sld [smem:[#allocation46_spill]] }
 0x3bf   : > { %1083 = vrot.lane.b32.xlu0 %v5132_v8, %s4738_s1  ;;  %s5458_s1 = smov 72  }
 0x3c2   : > { %1472 = vrot.lane.b32.xlu1 %v5132_v8, %s5459_s2 }
 0x3c3   : > { %1470 = vrot.lane.b32.xlu0 %v5132_v8, %s5463_s22  ;;  %s5517_s22 = smov %s5516_s3 }
 0x432   : > { %v1080_v29 = vpop.xlane.xlu0 %1079 }
 0x433   : > { %4166 = vrcp.f32 %v1080_v29 }
 0x436   : > { %v1245_v30 = vpop.xlane.xlu1 %1244  ;;  %v1084_v31 = vpop.permute.xlu0 %1083 }
 0x437   : > { %4168 = vrcp.f32 %v1245_v30  ;;  %3781 = vmatpush3.msra.mxu1 %v1084_v31 }
 0x438   : > { %3790 = vmatprep.subr.mxu1 %v4732_v0 }
 0x43a   : > { %v1249_v34 = vpop.permute.xlu1 %1248  ;;  %v1471_v44 = vpop.permute.xlu0 %1470 }
 0x43e   : > { %v1473_v42 = vpop.permute.xlu1 %1472 }
 0x440   : > { %v4167_v32 = vpop.eup %4166 }
 0x441   : > { %v1082_v33 = vmul.f32 %v4167_v32, %v4163_v25 }
 0x443   : > { %3783 = vmatmul.mubr.msk.f32.vlgmr.msra.gmra.mxu1 %vm997_vm2, %v1082_v33 }
 0x444   : > { %v4169_v35 = vpop.eup %4168  ;;  %3791 = vmatpush3.msra.mxu1 %v1249_v34  ;;  %3792 = vmatprep.mubr.msk.f32.mxu1 %vm4733_vm0, %v4732_v0 }
 0x445   : > { %v1247_v36 = vmul.f32 %v4169_v35, %v4165_v27  ;;  %3800 = vmatprep.subr.mxu1 %v4732_v0  ;;  %v2074_v35 = vld [vmem:[#allocation8 + $0x18] sm:$0xff] }
 0x447   : > { %3793 = vmatmul.mubr.msk.f32.vlgmr.msra.gmra.mxu1 %vm997_vm2, %v1247_v36  ;;  %v2073_v36 = vld [vmem:[#allocation8 + $0x10] sm:$0xff] }
 0x448   : > { %3802 = vmatprep.mubr.msk.f32.mxu1 %vm4733_vm0, %v4732_v0  ;;  %3801 = vmatpush3.msra.mxu1 %v990_v37  ;;  %v1990_v37 = vld [vmem:[%s5516_s3 + $0x18] sm:$0xff] }
 0x449   : > { %3810 = vmatprep.subr.mxu1 %v4732_v0 }
 0x503   : > { %v1155_v39 = vpop.f32.mrf.mxu1 }
 0x504   : > { %3803 = vmatmul.mubr.msk.f32.vlgmr.msra.gmra.mxu1 %vm997_vm2, %v1155_v39  ;;  %v1989_v39 = vld [vmem:[%s5517_s22 + $0x10] sm:$0xff] }
 0x505   : > { %v3784_v40 = vpop.f32.mrf.mxu1  ;;  %3812 = vmatprep.mubr.msk.f32.mxu1 %vm4733_vm0, %v4732_v0 }
 0x507   : > { %v1320_v41 = vpop.f32.mrf.mxu1 }
 0x508   : > { %3798 = vmatmul.mubr.msk.f32.vlgmr.msra.gmra.mxu0 %vm997_vm2, %v1320_v41  ;;  %v1988_v41 = vld [vmem:[%s5517_s22 + $0x8] sm:$0xff] }
 0x509   : > { %3806 = vmatpush3.xpose.msk.msra.mxu0 %vm997_vm2, %v1473_v42  ;;  %v3794_v43 = vpop.f32.mrf.mxu1  ;;  %3807 = vmatprep.mubr.msk.f32.mxu0 %vm4733_vm0, %v4732_v0  ;;  %v1987_v42 = vld [vmem:[%s5517_s22] sm:$0xff] }
 0x50a   : > { %3815 = vmatprep.subr.mxu0 %v4732_v0 }
 0x50c   : > { %3808 = vmatmul.mubr.msk.f32.vlgmr.msra.gmra.mxu0 %vm997_vm2, %v1471_v44 }
 0x50d   : > { %3817 = vmatprep.mubr.msk.f32.mxu0 %vm4733_vm0, %v4732_v0  ;;  %3816 = vmatpush3.msra.mxu0 %v992_v1 }
 0x50e   : > { %3825 = vmatprep.subr.mxu0 %v4732_v0 }
 0x5c4   : > { %v1466_v45 = vpop.f32.mrf.mxu1 }
 0x5c6   : > { %v3804_v46 = vpop.f32.mrf.mxu1 }
 0x5c8   : > { %v1393_v47 = vpop.f32.mrf.mxu0 }
 0x5c9   : > { %v1467_v48 = vadd.f32 %v1466_v45, %v1393_v47  ;;  %v3652_v47 = vld [vmem:[#allocation19] ss:$0 sm:$0xff] }
 0x5ca   : > { %v3799_v49 = vpop.f32.mrf.mxu0 }
 0x5cb   : > { %v3653_v49 = vld [vmem:[#allocation20] ss:$0 sm:$0xff] }
 0x5cc   : > { %v1544_v50 = vpop.f32.mrf.mxu0 }
 0x5cd   : > { %v1548_v51 = vsel %vm997_vm2, %v1544_v50, -inf }
 0x5ce   : > { %1549 = vmax.xlane.f32.xlu1 %v1548_v51  ;;  %v3809_v52 = vpop.f32.mrf.mxu0 }
 0x5cf   : > { %v3656_v52 = vld [vmem:[#allocation10] ss:$0 sm:$0xff] }
 0x5df   : > { %1711 = vrot.lane.b32.xlu1 %v5132_v8, %s5458_s1  ;;  %s902_s1 = scalar_lea.vmem %s5515_s27, %s3631_s26  ;;  %s5524_s27 = smov 72  }
 0x5e0   : > { %v904_v40 = vld [vmem:[%s902_s1] sm:$0xff]  ;;  %s5520_s1 = smov 112   ;;  %s5525_s26 = sld [smem:[#allocation54_spill]] }
 0x5e3   : > { %1709 = vrot.lane.b32.xlu1 %v5132_v8, %s5460_s25  ;;  %s5521_s25 = smov 96  }
 0x657   : > { %v1550_v53 = vpop.xlane.xlu1 %1549 }
 0x658   : > { %v1551_v54 = vsub.f32 %v1544_v50, %v1550_v53 }
 0x65a   : > { %v1552_v55 = vmul.f32 1.442695, %v1551_v54 }
 0x65b   : > { %v1712_v61 = vpop.permute.xlu1 %1711 }
 0x65c   : > { %4170 = vpow2.f32 %v1552_v55 }
 0x65f   : > { %v1710_v63 = vpop.permute.xlu1 %1709 }
 0x669   : > { %v4171_v56 = vpop.eup %4170 }
 0x66a   : > { %v1554_v57 = vsel %vm997_vm2, %v4171_v56, 0.0 }
 0x66b   : > { %1555 = vadd.xlane.f32.xlu0 %v1554_v57 }
 0x681   : > { %1559 = vrot.lane.b32.xlu0 %v5132_v8, %s4743_s24  ;;  %s4744_s24 = smov 40  }
 0x6f4   : > { %v1556_v58 = vpop.xlane.xlu0 %1555 }
 0x6f5   : > { %4172 = vrcp.f32 %v1556_v58 }
 0x6f8   : > { %v1560_v59 = vpop.permute.xlu0 %1559 }
 0x6f9   : > { %3811 = vmatpush3.msra.mxu1 %v1560_v59 }
 0x6fa   : > { %3820 = vmatprep.subr.mxu1 %v4732_v0 }
 0x702   : > { %v4173_v60 = vpop.eup %4172 }
 0x703   : > { %v1558_v62 = vmul.f32 %v4173_v60, %v4171_v56  ;;  %v3654_v56 = vld [vmem:[#allocation7] ss:$0 sm:$0xff] }
 0x705   : > { %3813 = vmatmul.mubr.msk.f32.vlgmr.msra.gmra.mxu1 %vm997_vm2, %v1558_v62 }
 0x706   : > { %3821 = vmatpush3.xpose.msk.msra.mxu1 %vm997_vm2, %v1712_v61  ;;  %3822 = vmatprep.mubr.msk.f32.mxu1 %vm4733_vm0, %v4732_v0 }
 0x707   : > { %3830 = vmatprep.subr.mxu1 %v4732_v0 }
 0x709   : > { %3823 = vmatmul.mubr.msk.f32.vlgmr.msra.gmra.mxu1 %vm997_vm2, %v1710_v63 }
 0x70a   : > { %3832 = vmatprep.mubr.msk.f32.mxu1 %vm4733_vm0, %v4732_v0  ;;  %3831 = vmatpush3.msra.mxu1 %v993_v15 }
 0x70b   : > { %3846 = vmatprep.subr.mxu1 %v4732_v0 }
 0x7c5   : > { %v1631_v2 = vpop.f32.mrf.mxu1 }
 0x7c6   : > { %3818 = vmatmul.mubr.msk.f32.vlgmr.msra.gmra.mxu0 %vm997_vm2, %v1631_v2 }
 0x7c7   : > { %v3814_v3 = vpop.f32.mrf.mxu1  ;;  %3827 = vmatprep.mubr.msk.f32.mxu0 %vm4733_vm0, %v4732_v0 }
 0x7c9   : > { %v1783_v4 = vpop.f32.mrf.mxu1 }
 0x7ca   : > { %v1787_v6 = vsel %vm997_vm2, %v1783_v4, -inf }
 0x7cb   : > { %1788 = vmax.xlane.f32.xlu0 %v1787_v6  ;;  %v3824_v7 = vpop.f32.mrf.mxu1 }
 0x7e1   : > { %1798 = vrot.lane.b32.xlu0 %v5132_v8, %s4744_s24  ;;  %s5522_s24 = smov 104  }
 0x854   : > { %v1789_v9 = vpop.xlane.xlu0 %1788 }
 0x855   : > { %v1790_v10 = vsub.f32 %v1783_v4, %v1789_v9 }
 0x857   : > { %v1791_v11 = vmul.f32 1.442695, %v1790_v10 }
 0x858   : > { %v1799_v12 = vpop.permute.xlu0 %1798 }
 0x859   : > { %4174 = vpow2.f32 %v1791_v11  ;;  %3826 = vmatpush3.msra.mxu0 %v1799_v12 }
 0x85a   : > { %3835 = vmatprep.subr.mxu0 %v4732_v0 }
 0x866   : > { %v4175_v13 = vpop.eup %4174 }
 0x867   : > { %v1793_v14 = vsel %vm997_vm2, %v4175_v13, 0.0 }
 0x868   : > { %1794 = vadd.xlane.f32.xlu1 %v1793_v14 }
 0x886   : > { %v1704_v8 = vpop.f32.mrf.mxu0 }
 0x887   : > { %v1708_v16 = vadd.f32 %v1704_v8, %v1467_v48 }
 0x888   : > { %v3819_v17 = vpop.f32.mrf.mxu0 }
 0x8f1   : > { %v1795_v18 = vpop.xlane.xlu1 %1794 }
 0x8f2   : > { %4176 = vrcp.f32 %v1795_v18 }
 0x8ff   : > { %v4177_v19 = vpop.eup %4176 }
 0x900   : > { %v1797_v20 = vmul.f32 %v4177_v19, %v4175_v13 }
 0x902   : > { %3828 = vmatmul.mubr.msk.f32.vlgmr.msra.gmra.mxu0 %vm997_vm2, %v1797_v20 }
 0x903   : > { %3843 = vmatprep.mubr.msk.f32.mxu0 %vm4733_vm0, %v4732_v0  ;;  %3836 = vmatpush3.msra.mxu0 %v1990_v37 }
 0x904   : > { %3837 = vmatprep.subr.mxu0 %v4732_v0 }
 0x905   : > { %3838 = vmatpush3.msra.mxu0 %v1989_v39 }
 0x906   : > { %3839 = vmatprep.subr.mxu0 %v4732_v0 }
 0x907   : > { %3840 = vmatpush3.msra.mxu0 %v1988_v41 }
 0x908   : > { %3841 = vmatprep.subr.mxu0 %v4732_v0 }
 0x909   : > { %3842 = vmatpush3.msra.mxu0 %v1987_v42 }
 0x90a   : > { %3857 = vmatprep.subr.mxu0 %v4732_v0 }
 0x9c2   : > { %v1870_v21 = vpop.f32.mrf.mxu0 }
 0x9c3   : > { %3833 = vmatmul.mubr.msk.f32.vlgmr.msra.gmra.mxu1 %vm997_vm2, %v1870_v21 }
 0x9c4   : > { %v3829_v22 = vpop.f32.mrf.mxu0  ;;  %3854 = vmatprep.mubr.msk.f32.mxu1 %vm4733_vm0, %v4732_v0  ;;  %3847 = vmatpush3.msra.mxu1 %v2074_v35 }
 0x9c5   : > { %3848 = vmatprep.subr.mxu1 %v4732_v0 }
 0x9c6   : > { %3849 = vmatpush3.msra.mxu1 %v2073_v36 }
 0x9c7   : > { %3850 = vmatprep.subr.mxu1 %v4732_v0 }
 0xa83   : > { %v1943_v23 = vpop.f32.mrf.mxu1 }
 0xa84   : > { %v1947_v25 = vadd.f32 %v1943_v23, %v1708_v16 }
 0xa85   : > { %v3834_v26 = vpop.f32.mrf.mxu1 }
 0xa86   : > { %v1955_v27 = vadd.f32 %v3651_v24, %v1947_v25  ;;  %v2155_v24 = vld [vmem:[#allocation11] sm:$0xff]  ;;  %v2156_v25 = vld [vmem:[#allocation11 + $0x8] sm:$0xff] }
 0xa88   : > { %v1956_v28 = vadd.f32 %v1955_v27, %v5124_v5  ;;  %v2072_v5 = vld [vmem:[#allocation8 + $0x8] sm:$0xff] }
 0xa89   : > { %3851 = vmatpush3.msra.mxu1 %v2072_v5 }
 0xa8a   : > { %v1957_v29 = vsel %vm916_vm1, %v1956_v28, 0.0  ;;  %3852 = vmatprep.subr.mxu1 %v4732_v0 }
 0xa8b   : > { %1958 = vadd.xlane.f32.xlu1 %v1957_v29  ;;  %3853 = vmatpush3.msra.mxu1 %v2071_v38 }
 0xa8c   : > { %3855 = vmatmul.mubr.msk.f32.vlgmr.msra.gmra.mxu1 %vm916_vm1, %v904_v40  ;;  %3862 = vmatprep.subr.mxu1 %v4732_v0 }
 0xa8d   : > { %3864 = vmatprep.mubr.msk.f32.mxu1 %vm4733_vm0, %v4732_v0 }
 0xb14   : > { %v1959_v30 = vpop.xlane.xlu1 %1958 }
 0xb15   : > { %v1961_v31 = vmul.f32 0.03125, %v1959_v30 }
 0xb17   : > { %v1962_v32 = vsub.f32 %v1956_v28, %v1961_v31 }
 0xb19   : > { %v1963_v33 = vmul.f32 %v1962_v32, %v1962_v32 }
 0xb1b   : > { %v1964_v34 = vsel %vm916_vm1, %v1963_v33, 0.0 }
 0xb1c   : > { %1965 = vadd.xlane.f32.xlu1 %v1964_v34 }
 0xb4c   : > { %v2151_v53 = vpop.f32.mrf.mxu1 }
 0xb4d   : > { %v5262_v54 = vadd.f32 %v3656_v52, %v2151_v53 }
 0xb4e   : > { %v3856_v55 = vpop.f32.mrf.mxu1 }
 0xb4f   : > { %2324 = vrot.lane.b32.xlu1 %v5262_v54, %s5518_s29 }
 0xba5   : > { %v1966_v43 = vpop.xlane.xlu1 %1965 }
 0xba6   : > { %v1967_v44 = vmul.f32 0.03125, %v1966_v43 }
 0xba8   : > { %v1968_v45 = vadd.f32 1e-05, %v1967_v44 }
 0xbaa   : > { %4178 = vrsqrt.f32 %v1968_v45 }
 0xbb7   : > { %v4179_v46 = vpop.eup %4178 }
 0xbb8   : > { %v1970_v48 = vmul.f32 %v4179_v46, %v1962_v32 }
 0xbba   : > { %v1978_v50 = vmul.f32 %v3652_v47, %v1970_v48 }
 0xbbc   : > { %v5256_v51 = vadd.f32 %v3653_v49, %v1978_v50  ;;  %v2157_v50 = vld [vmem:[#allocation11 + $0x10] sm:$0xff] }
 0xbbe   : > { %3844 = vmatmul.mubr.msk.f32.vlgmr.msra.gmra.mxu0 %vm916_vm1, %v5256_v51 }
 0xbbf   : > { %3859 = vmatprep.mubr.msk.f32.mxu0 %vm4733_vm0, %v4732_v0  ;;  %3858 = vmatpush3.xpose.msk.msra.mxu0 %vm997_vm2, %v5262_v54 }
 0xbc0   : > { %3867 = vmatprep.subr.mxu0 %v4732_v0 }
 0xbc1   : > { %v2325_v59 = vpop.permute.xlu1 %2324 }
 0xc7e   : > { %v2067_v57 = vpop.f32.mrf.mxu0 }
 0xc7f   : > { %v5269_v58 = vadd.f32 %v3654_v56, %v2067_v57 }
 0xc80   : > { %v3845_v60 = vpop.f32.mrf.mxu0 }
 0xc81   : > { %2322 = vrot.lane.b32.xlu0 %v5269_v58, %s5518_s29  ;;  %3860 = vmatmul.mubr.msk.f32.vlgmr.msra.gmra.mxu0 %vm997_vm2, %v5269_v58 }
 0xc82   : > { %3868 = vmatpush3.xpose.msk.msra.mxu0 %vm997_vm2, %v2325_v59  ;;  %3869 = vmatprep.mubr.msk.f32.mxu0 %vm4733_vm0, %v4732_v0 }
 0xc83   : > { %3877 = vmatprep.subr.mxu0 %v4732_v0 }
 0xcf3   : > { %v2323_v61 = vpop.permute.xlu0 %2322 }
 0xcf4   : > { %3870 = vmatmul.mubr.msk.f32.vlgmr.msra.gmra.mxu0 %vm997_vm2, %v2323_v61 }
 0xcf5   : > { %3879 = vmatprep.mubr.msk.f32.mxu0 %vm4733_vm0, %v4732_v0  ;;  %3878 = vmatpush3.msra.mxu0 %v2156_v25  ;;  %v3241_v25 = vld [vmem:[%s5437_s14 + $0x38] sm:$0xff] }
 0xcf6   : > { %3887 = vmatprep.subr.mxu0 %v4732_v0 }
 0xd41   : > { %v2231_v62 = vpop.f32.mrf.mxu0 }
 0xd42   : > { %v2235_v63 = vsel %vm997_vm2, %v2231_v62, -inf }
 0xd43   : > { %2236 = vmax.xlane.f32.xlu0 %v2235_v63  ;;  %v3861_v1 = vpop.f32.mrf.mxu0 }
 0xd44   : > { %v2158_v1 = vld [vmem:[#allocation11 + $0x18] sm:$0xff] }
 0xdb4   : > { %v2396_v2 = vpop.f32.mrf.mxu0 }
 0xdb5   : > { %v2400_v3 = vsel %vm997_vm2, %v2396_v2, -inf }
 0xdb6   : > { %2401 = vmax.xlane.f32.xlu1 %v2400_v3  ;;  %v3871_v4 = vpop.f32.mrf.mxu0 }
 0xdc7   : > { %2411 = vrot.lane.b32.xlu1 %v5262_v54, %s5519_s30  ;;  %s892_s30 = sand.u32 1, %s4704_s28  }
 0xdc8   : > { %s3355_s2 = scalar_lea.sflag [#allocation4], %s892_s30 }
 0xdcb   : > { %2635 = vrot.lane.b32.xlu1 %v5262_v54, %s5520_s1 }
 0xdcc   : > { %v2237_v6 = vpop.xlane.xlu0 %2236 }
 0xdcd   : > { %v2238_v7 = vsub.f32 %v2231_v62, %v2237_v6 }
 0xdcf   : > { %v2239_v9 = vmul.f32 1.442695, %v2238_v7 }
 0xdd1   : > { %4180 = vpow2.f32 %v2239_v9 }
 0xdde   : > { %v4181_v10 = vpop.eup %4180 }
 0xddf   : > { %v2241_v11 = vsel %vm997_vm2, %v4181_v10, 0.0 }
 0xde0   : > { %2242 = vadd.xlane.f32.xlu0 %v2241_v11 }
 0xe3f   : > { %v2402_v12 = vpop.xlane.xlu1 %2401 }
 0xe40   : > { %v2403_v13 = vsub.f32 %v2396_v2, %v2402_v12  ;;  %v3674_v12 = vld [vmem:[#allocation13] ss:$0 sm:$0xff] }
 0xe42   : > { %v2404_v14 = vmul.f32 1.442695, %v2403_v13 }
 0xe43   : > { %v2412_v21 = vpop.permute.xlu1 %2411 }
 0xe44   : > { %4182 = vpow2.f32 %v2404_v14 }
 0xe47   : > { %v2636_v29 = vpop.permute.xlu1 %2635 }
 0xe51   : > { %v4183_v15 = vpop.eup %4182 }
 0xe52   : > { %v2406_v8 = vsel %vm997_vm2, %v4183_v15, 0.0 }
 0xe53   : > { %2407 = vadd.xlane.f32.xlu0 %v2406_v8 }
 0xe69   : > { %2246 = vrot.lane.b32.xlu0 %v5262_v54, %s5521_s25  ;;  %v2243_v16 = vpop.xlane.xlu0 %2242  ;;  %s3684_s25 = sshll.u32 %s4882_s4, 7  ;;  %s4622_s4 = scalar_lea.vmem %s4621_s7, 256 }
 0xe6a   : > { %4184 = vrcp.f32 %v2243_v16  ;;  %s3366_s3 = scalar_lea.hbm %s5525_s26, %s3684_s25 }
 0xe6d   : > { %2633 = vrot.lane.b32.xlu0 %v5269_v58, %s5520_s1  ;;  %s3630_s1 = sshll.u32 %s892_s30, 3 }
 0xe77   : > { %v4185_v18 = vpop.eup %4184 }
 0xe78   : > { %v2245_v20 = vmul.f32 %v4185_v18, %v4181_v10 }
 0xedc   : > { %v2408_v17 = vpop.xlane.xlu0 %2407 }
 0xedd   : > { %4186 = vrcp.f32 %v2408_v17 }
 0xee0   : > { %v2247_v19 = vpop.permute.xlu0 %2246 }
 0xee1   : > { %3863 = vmatpush3.msra.mxu1 %v2247_v19 }
 0xee2   : > { %3865 = vmatmul.mubr.msk.f32.vlgmr.msra.gmra.mxu1 %vm997_vm2, %v2245_v20  ;;  %3872 = vmatprep.subr.mxu1 %v4732_v0 }
 0xee3   : > { %3873 = vmatpush3.msra.mxu1 %v2412_v21  ;;  %3874 = vmatprep.mubr.msk.f32.mxu1 %vm4733_vm0, %v4732_v0 }
 0xee4   : > { %3882 = vmatprep.subr.mxu1 %v4732_v0  ;;  %v2634_v31 = vpop.permute.xlu0 %2633 }
 0xeea   : > { %v4187_v22 = vpop.eup %4186 }
 0xeeb   : > { %v2410_v23 = vmul.f32 %v4187_v22, %v4183_v15  ;;  %v3152_v22 = vld [vmem:[#allocation14 + $0x18] sm:$0xff] }
 0xeed   : > { %3875 = vmatmul.mubr.msk.f32.vlgmr.msra.gmra.mxu1 %vm997_vm2, %v2410_v23  ;;  %v3151_v23 = vld [vmem:[#allocation14 + $0x10] sm:$0xff] }
 0xeee   : > { %3884 = vmatprep.mubr.msk.f32.mxu1 %vm4733_vm0, %v4732_v0  ;;  %3883 = vmatpush3.msra.mxu1 %v2155_v24  ;;  %v3150_v24 = vld [vmem:[#allocation14 + $0x8] sm:$0xff] }
 0xeef   : > { %3892 = vmatprep.subr.mxu1 %v4732_v0 }
 0xfa2   : > { %v2318_v26 = vpop.f32.mrf.mxu1 }
 0xfa3   : > { %3885 = vmatmul.mubr.msk.f32.vlgmr.msra.gmra.mxu1 %vm997_vm2, %v2318_v26  ;;  %v3240_v26 = vld [vmem:[%s5437_s14 + $0x30] sm:$0xff] }
 0xfa4   : > { %v3866_v27 = vpop.f32.mrf.mxu1  ;;  %3894 = vmatprep.mubr.msk.f32.mxu1 %vm4733_vm0, %v4732_v0 }
 0xfa5   : > { %v3239_v27 = vld [vmem:[%s5437_s14 + $0x28] sm:$0xff] }
 0xfad   : > { %v2483_v28 = vpop.f32.mrf.mxu1 }
 0xfae   : > { %3880 = vmatmul.mubr.msk.f32.vlgmr.msra.gmra.mxu0 %vm997_vm2, %v2483_v28  ;;  %v3238_v28 = vld [vmem:[%s5437_s14 + $0x20] sm:$0xff] }
 0xfaf   : > { %3888 = vmatpush3.xpose.msk.msra.mxu0 %vm997_vm2, %v2636_v29  ;;  %v3876_v30 = vpop.f32.mrf.mxu1  ;;  %3889 = vmatprep.mubr.msk.f32.mxu0 %vm4733_vm0, %v4732_v0  ;;  %v3237_v29 = vld [vmem:[%s5437_s14 + $0x18] sm:$0xff] }
 0xfb0   : > { %3897 = vmatprep.subr.mxu0 %v4732_v0 }
 0xfb2   : > { %3890 = vmatmul.mubr.msk.f32.vlgmr.msra.gmra.mxu0 %vm997_vm2, %v2634_v31 }
 0xfb3   : > { %3899 = vmatprep.mubr.msk.f32.mxu0 %vm4733_vm0, %v4732_v0  ;;  %3898 = vmatpush3.msra.mxu0 %v2157_v50 }
 0xfb4   : > { %3907 = vmatprep.subr.mxu0 %v4732_v0 }
0x1063   : > { %v2629_v32 = vpop.f32.mrf.mxu1 }
0x1065   : > { %v3886_v33 = vpop.f32.mrf.mxu1 }
0x106e   : > { %v2556_v34 = vpop.f32.mrf.mxu0 }
0x106f   : > { %v2630_v35 = vadd.f32 %v2629_v32, %v2556_v34  ;;  %v3675_v34 = vld [vmem:[#allocation22] ss:$0 sm:$0xff] }
0x1070   : > { %v3881_v36 = vpop.f32.mrf.mxu0 }
0x1071   : > { %v3676_v36 = vld [vmem:[#allocation23] ss:$0 sm:$0xff] }
0x1072   : > { %v2707_v5 = vpop.f32.mrf.mxu0 }
0x1073   : > { %v2711_v37 = vsel %vm997_vm2, %v2707_v5, -inf }
0x1074   : > { %2712 = vmax.xlane.f32.xlu1 %v2711_v37  ;;  %v3891_v38 = vpop.f32.mrf.mxu0 }
0x1075   : > { %v3236_v38 = vld [vmem:[%s5437_s14 + $0x10] sm:$0xff] }
0x1085   : > { %2874 = vrot.lane.b32.xlu1 %v5262_v54, %s5522_s24 }
0x1089   : > { %2872 = vrot.lane.b32.xlu1 %v5269_v58, %s5522_s24  ;;  %s894_s24 = scalar_lea.vmem [#allocation28], %s3630_s1 }
0x10fd   : > { %v2713_v39 = vpop.xlane.xlu1 %2712 }
0x10fe   : > { %v2714_v40 = vsub.f32 %v2707_v5, %v2713_v39  ;;  %v3235_v39 = vld [vmem:[%s5437_s14 + $0x8] sm:$0xff] }
0x1100   : > { %v2715_v41 = vmul.f32 1.442695, %v2714_v40  ;;  %v3234_v40 = vld [vmem:[%s5437_s14] sm:$0xff] }
0x1101   : > { %v2875_v47 = vpop.permute.xlu1 %2874 }
0x1102   : > { %4188 = vpow2.f32 %v2715_v41  ;;  %v3677_v41 = vld [vmem:[#allocation16] ss:$0 sm:$0xff] }
0x1105   : > { %v2873_v49 = vpop.permute.xlu1 %2872 }
0x110f   : > { %v4189_v42 = vpop.eup %4188 }
0x1110   : > { %v2717_v43 = vsel %vm997_vm2, %v4189_v42, 0.0 }
0x1111   : > { %2718 = vadd.xlane.f32.xlu0 %v2717_v43 }
0x1127   : > { %2722 = vrot.lane.b32.xlu0 %v5262_v54, %s5523_s0  ;;  %s3368_s0 = sshll.u32 %s894_s24, 4  ;;  %s3369_s0 = int_to_ptr.vmem [resolvable:$true] %s3368_s0 }
0x1128   : > { %s4616_s29 = scalar_lea.vmem %s3369_s0, 128  ;;  %p4623_p4 = scmp.lt.s32.totalorder %s3369_s0, %s4621_s7 }
0x1129   : > { %p4617_p12 = scmp.ne.s32.totalorder %s3369_s0, %s4616_s29  ;;  %p4624_p6 = scmp.lt.s32.totalorder %s4622_s4, %s4616_s29 }
0x112b   : > { %p4618_p1 = pnand %p4617_p12, %p5526_p10  ;;  %p4625_p9 = por %p4624_p6, %p4623_p4 }
0x112d   : > { %p4619_p5 = pneg %p4618_p1 }
0x112f   : > { %p4626_p7 = pnand %p4625_p9, %p4619_p5 }
0x119a   : > { %v2719_v44 = vpop.xlane.xlu0 %2718 }
0x119b   : > { %4190 = vrcp.f32 %v2719_v44 }
0x119e   : > { %v2723_v45 = vpop.permute.xlu0 %2722 }
0x119f   : > { %3893 = vmatpush3.msra.mxu1 %v2723_v45 }
0x11a0   : > { %3902 = vmatprep.subr.mxu1 %v4732_v0 }
0x11a8   : > { %v4191_v46 = vpop.eup %4190 }
0x11a9   : > { %v2721_v48 = vmul.f32 %v4191_v46, %v4189_v42  ;;  %v3679_v46 = vld [vmem:[#allocation17] ss:$0 sm:$0xff] }
0x11ab   : > { %3895 = vmatmul.mubr.msk.f32.vlgmr.msra.gmra.mxu1 %vm997_vm2, %v2721_v48 }
0x11ac   : > { %3903 = vmatpush3.xpose.msk.msra.mxu1 %vm997_vm2, %v2875_v47  ;;  %3904 = vmatprep.mubr.msk.f32.mxu1 %vm4733_vm0, %v4732_v0 }
0x11ad   : > { %3912 = vmatprep.subr.mxu1 %v4732_v0 }
0x11af   : > { %3905 = vmatmul.mubr.msk.f32.vlgmr.msra.gmra.mxu1 %vm997_vm2, %v2873_v49 }
0x11b0   : > { %3914 = vmatprep.mubr.msk.f32.mxu1 %vm4733_vm0, %v4732_v0  ;;  %3913 = vmatpush3.msra.mxu1 %v2158_v1  ;;  %v3682_v1 = vld [vmem:[#allocation26] ss:$0 sm:$0xff] }
0x11b1   : > { %3928 = vmatprep.subr.mxu1 %v4732_v0 }
0x126b   : > { %v2794_v52 = vpop.f32.mrf.mxu1 }
0x126c   : > { %3900 = vmatmul.mubr.msk.f32.vlgmr.msra.gmra.mxu0 %vm997_vm2, %v2794_v52 }
0x126d   : > { %v3896_v53 = vpop.f32.mrf.mxu1  ;;  %3909 = vmatprep.mubr.msk.f32.mxu0 %vm4733_vm0, %v4732_v0 }
0x126f   : > { %v2946_v55 = vpop.f32.mrf.mxu1 }
0x1270   : > { %v2950_v56 = vsel %vm997_vm2, %v2946_v55, -inf }
0x1271   : > { %2951 = vmax.xlane.f32.xlu0 %v2950_v56  ;;  %v3906_v57 = vpop.f32.mrf.mxu1 }
0x1287   : > { %2961 = vrot.lane.b32.xlu0 %v5262_v54, %s5524_s27 }
0x12fa   : > { %v2952_v58 = vpop.xlane.xlu0 %2951 }
0x12fb   : > { %v2953_v59 = vsub.f32 %v2946_v55, %v2952_v58 }
0x12fd   : > { %v2954_v60 = vmul.f32 1.442695, %v2953_v59 }
0x12fe   : > { %v2962_v61 = vpop.permute.xlu0 %2961 }
0x12ff   : > { %4192 = vpow2.f32 %v2954_v60  ;;  %3908 = vmatpush3.msra.mxu0 %v2962_v61 }
0x1300   : > { %3917 = vmatprep.subr.mxu0 %v4732_v0 }
0x130c   : > { %v4193_v62 = vpop.eup %4192 }
0x130d   : > { %v2956_v63 = vsel %vm997_vm2, %v4193_v62, 0.0 }
0x130e   : > { %2957 = vadd.xlane.f32.xlu1 %v2956_v63 }
0x132c   : > { %v2867_v2 = vpop.f32.mrf.mxu0 }
0x132d   : > { %v2871_v3 = vadd.f32 %v2867_v2, %v2630_v35 }
0x132e   : > { %v3901_v4 = vpop.f32.mrf.mxu0 }
0x1397   : > { %v2958_v54 = vpop.xlane.xlu1 %2957 }
0x1398   : > { %4194 = vrcp.f32 %v2958_v54 }
0x13a5   : > { %v4195_v6 = vpop.eup %4194 }
0x13a6   : > { %v2960_v7 = vmul.f32 %v4195_v6, %v4193_v62  ;;  %v3681_v62 = vld [vmem:[#allocation25] ss:$0 sm:$0xff] }
0x13a8   : > { %3910 = vmatmul.mubr.msk.f32.vlgmr.msra.gmra.mxu0 %vm997_vm2, %v2960_v7 }
0x13a9   : > { %3925 = vmatprep.mubr.msk.f32.mxu0 %vm4733_vm0, %v4732_v0  ;;  %3918 = vmatpush3.msra.mxu0 %v3152_v22 }
0x13aa   : > { %3919 = vmatprep.subr.mxu0 %v4732_v0 }
0x13ab   : > { %3920 = vmatpush3.msra.mxu0 %v3151_v23 }
0x13ac   : > { %3921 = vmatprep.subr.mxu0 %v4732_v0 }
0x13ad   : > { %3922 = vmatpush3.msra.mxu0 %v3150_v24 }
0x13ae   : > { %3923 = vmatprep.subr.mxu0 %v4732_v0 }
0x1468   : > { %v3033_v9 = vpop.f32.mrf.mxu0 }
0x1469   : > { %3915 = vmatmul.mubr.msk.f32.vlgmr.msra.gmra.mxu1 %vm997_vm2, %v3033_v9 }
0x146a   : > { %v3911_v10 = vpop.f32.mrf.mxu0  ;;  %3944 = vmatprep.mubr.msk.f32.mxu1 %vm4733_vm0, %v4732_v0  ;;  %3929 = vmatpush3.msra.mxu1 %v3241_v25 }
0x146b   : > { %3930 = vmatprep.subr.mxu1 %v4732_v0 }
0x146c   : > { %3931 = vmatpush3.msra.mxu1 %v3240_v26 }
0x146d   : > { %3932 = vmatprep.subr.mxu1 %v4732_v0 }
0x146e   : > { %3933 = vmatpush3.msra.mxu1 %v3239_v27 }
0x146f   : > { %3934 = vmatprep.subr.mxu1 %v4732_v0 }
0x1470   : > { %3935 = vmatpush3.msra.mxu1 %v3238_v28 }
0x1471   : > { %3936 = vmatprep.subr.mxu1 %v4732_v0 }
0x1472   : > { %3937 = vmatpush3.msra.mxu1 %v3237_v29 }
0x1473   : > { %3938 = vmatprep.subr.mxu1 %v4732_v0 }
0x1474   : > { %3939 = vmatpush3.msra.mxu1 %v3236_v38 }
0x1475   : > { %3940 = vmatprep.subr.mxu1 %v4732_v0 }
0x1476   : > { %3941 = vmatpush3.msra.mxu1 %v3235_v39 }
0x1477   : > { %3942 = vmatprep.subr.mxu1 %v4732_v0 }
0x1478   : > { %3943 = vmatpush3.msra.mxu1 %v3234_v40 }
0x1529   : > { %v3106_v11 = vpop.f32.mrf.mxu1 }
0x152a   : > { %v3110_v13 = vadd.f32 %v3106_v11, %v2871_v3 }
0x152b   : > { %v3916_v14 = vpop.f32.mrf.mxu1 }
0x152c   : > { %v3118_v15 = vadd.f32 %v3674_v12, %v3110_v13 }
0x152e   : > { %v3119_v8 = vadd.f32 %v3118_v15, %v5256_v51  ;;  %v3149_v51 = vld [vmem:[#allocation14] sm:$0xff] }
0x152f   : > { %3924 = vmatpush3.msra.mxu0 %v3149_v51 }
0x1530   : > { %v3120_v16 = vsel %vm916_vm1, %v3119_v8, 0.0 }
0x1531   : > { %3121 = vadd.xlane.f32.xlu1 %v3120_v16 }
0x15ba   : > { %v3122_v17 = vpop.xlane.xlu1 %3121 }
0x15bb   : > { %v3123_v18 = vmul.f32 0.03125, %v3122_v17 }
0x15bd   : > { %v3124_v19 = vsub.f32 %v3119_v8, %v3123_v18 }
0x15bf   : > { %v3125_v20 = vmul.f32 %v3124_v19, %v3124_v19 }
0x15c1   : > { %v3126_v21 = vsel %vm916_vm1, %v3125_v20, 0.0 }
0x15c2   : > { %3127 = vadd.xlane.f32.xlu1 %v3126_v21 }
0x164b   : > { %v3128_v30 = vpop.xlane.xlu1 %3127 }
0x164c   : > { %v3129_v31 = vmul.f32 0.03125, %v3128_v30 }
0x164e   : > { %v3130_v32 = vadd.f32 1e-05, %v3129_v31 }
0x1650   : > { %4196 = vrsqrt.f32 %v3130_v32 }
0x165d   : > { %v4197_v33 = vpop.eup %4196 }
0x165e   : > { %v3132_v35 = vmul.f32 %v4197_v33, %v3124_v19 }
0x1660   : > { %v3140_v5 = vmul.f32 %v3675_v34, %v3132_v35 }
0x1662   : > { %v3148_v37 = vadd.f32 %v3676_v36, %v3140_v5 }
0x1664   : > { %3926 = vmatmul.mubr.msk.f32.vlgmr.msra.gmra.mxu0 %vm916_vm1, %v3148_v37 }
0x1724   : > { %v3229_v42 = vpop.f32.mrf.mxu0 }
0x1725   : > { %v3230_v43 = vadd.f32 %v3677_v41, %v3229_v42 }
0x1726   : > { %v3927_v44 = vpop.f32.mrf.mxu0 }
0x1727   : > { %v3233_v45 = vmax.f32 %v3230_v43, 0.0 }
0x1729   : > { %3945 = vmatmul.mubr.msk.f32.vlgmr.msra.gmra.mxu1 %vm3249_vm3, %v3233_v45 }
0x17e9   : > { %v3319_v47 = vpop.f32.mrf.mxu1 }
0x17ea   : > { %v3320_v48 = vadd.f32 %v3679_v46, %v3319_v47 }
0x17eb   : > { %v3946_v49 = vpop.f32.mrf.mxu1 }
0x17ec   : > { %v3323_v50 = vadd.f32 %v3320_v48, %v3148_v37 }
0x17ee   : > { %v3324_v52 = vsel %vm916_vm1, %v3323_v50, 0.0 }
0x17ef   : > { %3325 = vadd.xlane.f32.xlu1 %v3324_v52 }
0x1878   : > { %v3326_v53 = vpop.xlane.xlu1 %3325 }
0x1879   : > { %v3327_v0 = vmul.f32 0.03125, %v3326_v53 }
0x187b   : > { %v3328_v55 = vsub.f32 %v3323_v50, %v3327_v0 }
0x187d   : > { %v3329_v56 = vmul.f32 %v3328_v55, %v3328_v55 }
0x187f   : > { %v3330_v57 = vsel %vm916_vm1, %v3329_v56, 0.0 }
0x1880   : > { %3331 = vadd.xlane.f32.xlu1 %v3330_v57 }
0x1909   : > { %v3332_v58 = vpop.xlane.xlu1 %3331 }
0x190a   : > { %v3333_v59 = vmul.f32 0.03125, %v3332_v58 }
0x190c   : > { %v3334_v60 = vadd.f32 1e-05, %v3333_v59 }
0x190e   : > { %4198 = vrsqrt.f32 %v3334_v60 }
0x191b   : > { %v4199_v61 = vpop.eup %4198 }
0x191c   : > { %v3336_v63 = vmul.f32 %v4199_v61, %v3328_v55 }
0x191e   : > { %v3344_v2 = vmul.f32 %v3681_v62, %v3336_v63 }
0x1920   : > { %v3352_v3 = vadd.f32 %v3682_v1, %v3344_v2 }
0x1922   : > { %3353 = vst.msk [vmem:[%s894_s24] sm:$0xff] %vm916_vm1, %v3352_v3 }
0x1923   : > { %4629 = shalt.err (!%p4626_p7)
}
0x1924   : > { %s4630_s1 = scalar_lea.hbm %s3366_s3, 128  ;;  %s4634_s24 = scalar_lea.hbm %s5525_s26, 256 }
0x1925   : > { %p4631_p8 = scmp.ne.s32.totalorder %s3366_s3, %s4630_s1  ;;  %p4635_p11 = scmp.lt.s32.totalorder %s3366_s3, %s5525_s26 }
0x1926   : > { %p4636_p3 = scmp.lt.s32.totalorder %s4634_s24, %s4630_s1 }
0x1927   : > { %p4632_p0 = pnand %p4631_p8, %p5526_p10 }
0x1928   : > { %p4637_p2 = por %p4636_p3, %p4635_p11 }
0x1929   : > { %p4633_p13 = pneg %p4632_p0 }
0x192b   : > { %p4638_p12 = pnand %p4637_p2, %p4633_p13 }
0x192d   : > { %4641 = shalt.err (!%p4638_p12)
}
0x192e   : > { %4011 = dma.vmem_to_hbm [thread:$0]  (%p5526_p10), %s3369_s0, 128, %s3366_s3, %s3355_s2  }
0x192f PF: > { %s5527_s7 = sld [smem:[#allocation41_spill]] }
0x1930   : > { %s5528_s5 = sld [smem:[#allocation39_spill]] }
0x1931   : > { %s5529_s29 = sld [smem:[#allocation44_spill]] }
0x1935   : > { %p4098_p1 = scmp.ge.s32.totalorder %s5527_s7, 2 }
0x1936   : > { %s3380_s4 = sand.u32 1, %s5528_s5  }
0x1937   : > { %p5530_p5 = scmp.ne.s32.totalorder %s5529_s29, 0  ;;  %s3381_s30 = scalar_lea.sflag [#allocation4], %s3380_s4 }
0x1939   : > { %p4063_p4 = pnand %p4098_p1, %p5530_p5 }
0x193b   : > { %p4064_p6 = pneg %p4063_p4 }
0x193d   : > { %4695 = dma.done.wait (%p4064_p6), %s3381_s30, 128  }
0x193e   : > { %4697 = vsyncadd (%p4064_p6), %s3381_s30, 4294967168  ;;  %s5531_s30 = sld [smem:[#allocation42_spill]]  ;;  %s5534_s3 = smov %s4704_s28 }
0x193f   : > { %s5532_s1 = sld [smem:[#allocation40_spill]] }
0x1940   : > { %s5533_s29 = sld [smem:[#allocation43_spill]] }
0x1944   : > { %p41_p9 = scmp.ge.s32.totalorder %s5531_s30, 4  }
0x1945   : > { %s5535_s28 = smov %s5532_s1 }
0x1946   :  { %43 = sbr.rel (!%p41_p9) target bundleno = 23 (0x17), region = 211 }
0x194b   :  { %3386 = vsyncpa [#allocation3], 1 }
0x194c   :  { %3388 = vsyncpa [#allocation3 + $0x1], 1 }
0x194d   :  { %3389 = vsyncpa [#allocation6], 1 }
0x194e   :  { %3390 = vsyncpa [#allocation9], 1 }
0x194f   :  { %3391 = vsyncpa [#allocation12], 1 }
0x1950   :  { %3392 = vsyncpa [#allocation15], 1 }
0x1951   :  { %3393 = vsyncpa [#allocation18], 1 }
0x1952   :  { %3394 = vsyncpa [#allocation21], 1 }
0x1953   :  { %3395 = vsyncpa [#allocation24], 1 }
0x1954   :  { %3396 = vsyncpa [#allocation27], 1 }
0x1955   :  { %3397 = vsyncpa [#allocation4], 1 }
0x1956   :  { %3399 = vsyncpa [#allocation4 + $0x1], 1 }

</bundles_post_ra>
